<compile_context>
chip_gen: v7x
topology: tpu7x:2x2x1
jax: 0.10.0
libtpu: 0.0.40
codegen_flags: <defaults>
</compile_context>

<pallas_src>
import functools

import jax
import jax.numpy as jnp
from jax.experimental import pallas as pl
from jax.experimental.pallas import tpu as pltpu


def _convlstm_kernel(x_ref, h_ref, c_ref, wx_ref, wh_ref, b_ref,
                     h_out_ref, c_out_ref, *, H, W, Ch, KH, KW):
    """ConvLSTM cell for one block of `BB` batch elements.

    x_ref     : (BB, Cin, H*W)      input, channel-major / lane-dense
    h_ref     : (BB, Ch,  H*W)      hidden state
    c_ref     : (BB, Ch,  H*W)      cell state
    wx_ref    : (KH*KW, 4*Ch, Cin)  conv-weight taps acting on x
    wh_ref    : (KH*KW, 4*Ch, Ch)   conv-weight taps acting on h
    b_ref     : (4*Ch, 1)           conv bias (column vector)
    h_out_ref : (BB, Ch, H*W)
    c_out_ref : (BB, Ch, H*W)
    """
    BB = x_ref.shape[0]
    HW = H * W
    N = BB * HW
    ph, pw = KH // 2, KW // 2

    def lane_fold(ref):
        # (BB, C, HW) -> (C, BB*HW).  HW is a multiple of 128, so this concat
        # is plain vreg placement at aligned lane offsets (no lane shifts).
        parts = [ref[b].astype(jnp.float32) for b in range(BB)]
        return parts[0] if BB == 1 else jnp.concatenate(parts, axis=-1)

    x = lane_fold(x_ref)                                  # (Cin, N)
    h = lane_fold(h_ref)                                  # (Ch,  N)

    # Within-image coordinates of every output pixel (remainder-only math,
    # shared by all taps; W and H*W both divide N so batch folding is safe).
    lane = jax.lax.broadcasted_iota(jnp.int32, (1, N), 1)
    col = lane % W                                        # within-row x
    pos = lane % HW                                       # within-image y*W+x

    # KH*KW accumulated per-tap matmuls; halos via pltpu.roll + border masks.
    # Any circular wrap of the roll is an out-of-image source pixel and is
    # zeroed by the same mask, so no padded canvas is needed.
    acc = jnp.zeros((4 * Ch, N), jnp.float32)
    for kh in range(KH):
        dy = kh - ph
        for kw in range(KW):
            dx = kw - pw
            t = kh * KW + kw
            off = dy * W + dx                             # tap[m] = src[m + off]
            if off == 0:
                xt, ht = x, h
            else:
                shift = (-off) % N                        # jnp.roll semantics
                xt = pltpu.roll(x, shift, axis=1)
                ht = pltpu.roll(h, shift, axis=1)
            conds = []
            if dx > 0:
                conds.append(col < W - dx)
            elif dx < 0:
                conds.append(col >= -dx)
            if dy > 0:
                conds.append(pos < (H - dy) * W)
            elif dy < 0:
                conds.append(pos >= -dy * W)
            if conds:
                valid = conds[0]
                for extra in conds[1:]:
                    valid = jnp.logical_and(valid, extra)
                xt = jnp.where(valid, xt, 0.0)
                ht = jnp.where(valid, ht, 0.0)
            acc = acc + jax.lax.dot_general(
                wx_ref[t].astype(jnp.float32), xt,
                dimension_numbers=(((1,), (0,)), ((), ())),
                preferred_element_type=jnp.float32)
            acc = acc + jax.lax.dot_general(
                wh_ref[t].astype(jnp.float32), ht,
                dimension_numbers=(((1,), (0,)), ((), ())),
                preferred_element_type=jnp.float32)

    acc = acc + b_ref[...].astype(jnp.float32)            # (4*Ch, N)

    # Gates in torch.split order (i, f, o, g); sigmoid as one EUP slab.
    sig = jax.nn.sigmoid(acc[:3 * Ch, :])
    i = sig[0 * Ch:1 * Ch, :]
    f = sig[1 * Ch:2 * Ch, :]
    o = sig[2 * Ch:3 * Ch, :]
    g = jnp.tanh(acc[3 * Ch:, :])

    c_cur = lane_fold(c_ref)                               # (Ch, N)
    c_next = f * c_cur + i * g
    h_next = o * jnp.tanh(c_next)

    for b in range(BB):                                    # 256-aligned dense stores
        sl = slice(b * HW, (b + 1) * HW)
        h_out_ref[b] = h_next[:, sl].astype(h_out_ref.dtype)
        c_out_ref[b] = c_next[:, sl].astype(c_out_ref.dtype)


def _fold_batch_default():
    """Fold the whole batch into one grid step on single-TensorCore chips
    (v5e / v6e); keep a parallel batch grid on v7x (2 TensorCores/chip)."""
    try:
        kind = jax.devices()[0].device_kind.lower()
    except Exception:
        return True
    return not ("v7" in kind or "7x" in kind)


def conv_lstm_cell(x, h_cur, c_cur, weight, bias, *, fold_batch=None):
    """ConvLSTM cell forward, PyTorch layout.

    x      : (B, Cin, H, W)
    h_cur  : (B, Ch,  H, W)
    c_cur  : (B, Ch,  H, W)
    weight : (4*Ch, Cin + Ch, KH, KW)   nn.Conv2d OIHW weight
    bias   : (4*Ch,)
    Returns (h_next, c_next), each (B, Ch, H, W).
    """
    B, Cin, H, W = x.shape
    Ch = h_cur.shape[1]
    Oc, Cc, KH, KW = weight.shape
    assert Oc == 4 * Ch and Cc == Cin + Ch
    assert KH % 2 == 1 and KW % 2 == 1, "odd kernel sizes only ('same' conv)"
    HW = H * W

    if fold_batch is None:
        fold_batch = _fold_batch_default()
    block_b = B if fold_batch else 1
    grid_b = B // block_b

    # Free NCHW -> (B, C, H*W) reshapes; no NHWC transposes / concat copies.
    x3 = x.reshape(B, Cin, HW)
    h3 = h_cur.reshape(B, Ch, HW)
    c3 = c_cur.reshape(B, Ch, HW)

    # Split the conv weight into its x / h halves, tap-major, so each tap's
    # weight is a cheap leading-axis slice inside the kernel.  (Hoist this
    # outside the time loop when running a real recurrence.)
    wx = jnp.transpose(weight[:, :Cin], (2, 3, 0, 1)).reshape(KH * KW, 4 * Ch, Cin)
    wh = jnp.transpose(weight[:, Cin:], (2, 3, 0, 1)).reshape(KH * KW, 4 * Ch, Ch)
    b2 = bias.reshape(4 * Ch, 1)

    kernel = functools.partial(_convlstm_kernel, H=H, W=W, Ch=Ch, KH=KH, KW=KW)

    h3n, c3n = pl.pallas_call(
        kernel,
        out_shape=(jax.ShapeDtypeStruct((B, Ch, HW), x.dtype),
                   jax.ShapeDtypeStruct((B, Ch, HW), x.dtype)),
        grid_spec=pltpu.PrefetchScalarGridSpec(
            num_scalar_prefetch=0,
            grid=(grid_b,),
            in_specs=[
                pl.BlockSpec((block_b, Cin, HW), lambda b: (b, 0, 0)),
                pl.BlockSpec((block_b, Ch, HW), lambda b: (b, 0, 0)),
                pl.BlockSpec((block_b, Ch, HW), lambda b: (b, 0, 0)),
                pl.BlockSpec((KH * KW, 4 * Ch, Cin), lambda b: (0, 0, 0)),
                pl.BlockSpec((KH * KW, 4 * Ch, Ch), lambda b: (0, 0, 0)),
                pl.BlockSpec((4 * Ch, 1), lambda b: (0, 0)),
            ],
            out_specs=[
                pl.BlockSpec((block_b, Ch, HW), lambda b: (b, 0, 0)),
                pl.BlockSpec((block_b, Ch, HW), lambda b: (b, 0, 0)),
            ],
        ),
        compiler_params=pltpu.CompilerParams(
            # Independent batch blocks -> both TensorCores on v7x when
            # fold_batch=False; harmless for the single-step folded case.
            dimension_semantics=("parallel",)),
    )(x3, h3, c3, wx, wh, b2)

    return h3n.reshape(B, Ch, H, W), c3n.reshape(B, Ch, H, W)


def _reference(x, h_cur, c_cur, weight, bias):
    """Pure-JAX (lax.conv) mirror of the PyTorch forward, NCHW."""
    KH, KW = weight.shape[2], weight.shape[3]
    combined = jnp.concatenate([x, h_cur], axis=1)
    conv = jax.lax.conv_general_dilated(
        combined, weight, window_strides=(1, 1),
        padding=((KH // 2, KH // 2), (KW // 2, KW // 2)),
        dimension_numbers=("NCHW", "OIHW", "NCHW"))
    conv = conv + bias.reshape(1, -1, 1, 1)
    cc_i, cc_f, cc_o, cc_g = jnp.split(conv, 4, axis=1)
    i = jax.nn.sigmoid(cc_i)
    f = jax.nn.sigmoid(cc_f)
    o = jax.nn.sigmoid(cc_o)
    g = jnp.tanh(cc_g)
    c_next = f * c_cur + i * g
    h_next = o * jnp.tanh(c_next)
    return h_next, c_next


if __name__ == "__main__":
    # Module config: input_dim=4, hidden_dim=8, kernel_size=(3, 3), bias=True.
    B, Cin, Ch, H, W = 2, 4, 8, 16, 16
    KH = KW = 3

    key = jax.random.PRNGKey(0)
    kx, kh, kc, kw, kb = jax.random.split(key, 5)
    x = jax.random.normal(kx, (B, Cin, H, W), jnp.float32)
    h0 = jax.random.normal(kh, (B, Ch, H, W), jnp.float32)
    c0 = jax.random.normal(kc, (B, Ch, H, W), jnp.float32)
    # nn.Conv2d(Cin + Ch, 4*Ch, (3, 3), padding=1, bias=True) params (OIHW).
    weight = jax.random.normal(kw, (4 * Ch, Cin + Ch, KH, KW), jnp.float32) * 0.1
    bias = jax.random.normal(kb, (4 * Ch,), jnp.float32) * 0.1

    fwd = jax.jit(conv_lstm_cell)
    h_next, c_next = fwd(x, h0, c0, weight, bias)
    jax.block_until_ready((h_next, c_next))

    h_ref, c_ref = _reference(x, h0, c0, weight, bias)
    assert jnp.allclose(h_next, h_ref, atol=1e-5, rtol=1e-5), "h_next mismatch"
    assert jnp.allclose(c_next, c_ref, atol=1e-5, rtol=1e-5), "c_next mismatch"

    print("KERNEL_OK")
</pallas_src>

<mosaic_0001>
module attributes {stable_mosaic.version = 11 : i64} {
  func.func @_convlstm_kernel(%arg0: i32, %arg1: memref<2x4x256xf32, #tpu.memory_space<vmem>>, %arg2: memref<2x8x256xf32, #tpu.memory_space<vmem>>, %arg3: memref<2x8x256xf32, #tpu.memory_space<vmem>>, %arg4: memref<9x32x4xf32, #tpu.memory_space<vmem>>, %arg5: memref<9x32x8xf32, #tpu.memory_space<vmem>>, %arg6: memref<32x1xf32, #tpu.memory_space<vmem>>, %arg7: memref<2x8x256xf32, #tpu.memory_space<vmem>>, %arg8: memref<2x8x256xf32, #tpu.memory_space<vmem>>) attributes {dimension_semantics = [#tpu.dimension_semantics<parallel>], iteration_bounds = array<i64: 1>, scalar_prefetch = 0 : i64, scratch_operands = 0 : i64, tpu.core_type = #tpu.core_type<tc>, window_params = [{transform_indices = @transform_0, window_bounds = array<i64: 2, 4, 256>}, {transform_indices = @transform_1, window_bounds = array<i64: 2, 8, 256>}, {transform_indices = @transform_2, window_bounds = array<i64: 2, 8, 256>}, {pipeline_mode = #tpu.pipeline_mode<synchronous>, transform_indices = @transform_3, window_bounds = array<i64: 9, 32, 4>}, {pipeline_mode = #tpu.pipeline_mode<synchronous>, transform_indices = @transform_4, window_bounds = array<i64: 9, 32, 8>}, {pipeline_mode = #tpu.pipeline_mode<synchronous>, transform_indices = @transform_5, window_bounds = array<i64: 32, 1>}, {transform_indices = @transform_6, window_bounds = array<i64: 2, 8, 256>}, {transform_indices = @transform_7, window_bounds = array<i64: 2, 8, 256>}]} {
    %c0 = arith.constant 0 : index
    %c0_0 = arith.constant 0 : index
    %c0_1 = arith.constant 0 : index
    %0 = vector.load %arg1[%c0, %c0_0, %c0_1] : memref<2x4x256xf32, #tpu.memory_space<vmem>>, vector<1x4x256xf32>
    %1 = vector.shape_cast %0 : vector<1x4x256xf32> to vector<4x256xf32>
    %c1 = arith.constant 1 : index
    %c0_2 = arith.constant 0 : index
    %c0_3 = arith.constant 0 : index
    %2 = vector.load %arg1[%c1, %c0_2, %c0_3] : memref<2x4x256xf32, #tpu.memory_space<vmem>>, vector<1x4x256xf32>
    %3 = vector.shape_cast %2 : vector<1x4x256xf32> to vector<4x256xf32>
    %4 = tpu.concatenate %1, %3 in 1 : vector<4x256xf32>, vector<4x256xf32> -> vector<4x512xf32>
    %c0_4 = arith.constant 0 : index
    %c0_5 = arith.constant 0 : index
    %c0_6 = arith.constant 0 : index
    %5 = vector.load %arg2[%c0_4, %c0_5, %c0_6] : memref<2x8x256xf32, #tpu.memory_space<vmem>>, vector<1x8x256xf32>
    %6 = vector.shape_cast %5 : vector<1x8x256xf32> to vector<8x256xf32>
    %c1_7 = arith.constant 1 : index
    %c0_8 = arith.constant 0 : index
    %c0_9 = arith.constant 0 : index
    %7 = vector.load %arg2[%c1_7, %c0_8, %c0_9] : memref<2x8x256xf32, #tpu.memory_space<vmem>>, vector<1x8x256xf32>
    %8 = vector.shape_cast %7 : vector<1x8x256xf32> to vector<8x256xf32>
    %9 = tpu.concatenate %6, %8 in 1 : vector<8x256xf32>, vector<8x256xf32> -> vector<8x512xf32>
    %10 = tpu.iota {dimensions = array<i32: 1>} : vector<1x512xi32>
    %c16_i32 = arith.constant 16 : i32
    %c0_i32 = arith.constant 0 : i32
    %11 = arith.cmpi eq, %c16_i32, %c0_i32 : i32
    %c1_i32 = arith.constant 1 : i32
    %12 = arith.select %11, %c1_i32, %c16_i32 : i32
    %13 = vector.broadcast %12 : i32 to vector<1x512xi32>
    %14 = arith.remsi %10, %13 : vector<1x512xi32>
    %c0_i32_10 = arith.constant 0 : i32
    %15 = vector.broadcast %c0_i32_10 : i32 to vector<1x512xi32>
    %16 = arith.cmpi ne, %14, %15 : vector<1x512xi32>
    %c0_i32_11 = arith.constant 0 : i32
    %17 = vector.broadcast %c0_i32_11 : i32 to vector<1x512xi32>
    %18 = arith.cmpi slt, %14, %17 : vector<1x512xi32>
    %c0_i32_12 = arith.constant 0 : i32
    %19 = arith.cmpi slt, %12, %c0_i32_12 : i32
    %20 = vector.broadcast %19 : i1 to vector<1x512xi1>
    %21 = vector.broadcast %20 : vector<1x512xi1> to vector<1x512xi1>
    %22 = arith.xori %18, %21 : vector<1x512xi1>
    %23 = arith.andi %22, %16 : vector<1x512xi1>
    %24 = vector.broadcast %12 : i32 to vector<1x512xi32>
    %25 = arith.addi %14, %24 : vector<1x512xi32>
    %26 = arith.select %23, %25, %14 : vector<1x512xi1>, vector<1x512xi32>
    %c256_i32 = arith.constant 256 : i32
    %c0_i32_13 = arith.constant 0 : i32
    %27 = arith.cmpi eq, %c256_i32, %c0_i32_13 : i32
    %c1_i32_14 = arith.constant 1 : i32
    %28 = arith.select %27, %c1_i32_14, %c256_i32 : i32
    %29 = vector.broadcast %28 : i32 to vector<1x512xi32>
    %30 = arith.remsi %10, %29 : vector<1x512xi32>
    %c0_i32_15 = arith.constant 0 : i32
    %31 = vector.broadcast %c0_i32_15 : i32 to vector<1x512xi32>
    %32 = arith.cmpi ne, %30, %31 : vector<1x512xi32>
    %c0_i32_16 = arith.constant 0 : i32
    %33 = vector.broadcast %c0_i32_16 : i32 to vector<1x512xi32>
    %34 = arith.cmpi slt, %30, %33 : vector<1x512xi32>
    %c0_i32_17 = arith.constant 0 : i32
    %35 = arith.cmpi slt, %28, %c0_i32_17 : i32
    %36 = vector.broadcast %35 : i1 to vector<1x512xi1>
    %37 = vector.broadcast %36 : vector<1x512xi1> to vector<1x512xi1>
    %38 = arith.xori %34, %37 : vector<1x512xi1>
    %39 = arith.andi %38, %32 : vector<1x512xi1>
    %40 = vector.broadcast %28 : i32 to vector<1x512xi32>
    %41 = arith.addi %30, %40 : vector<1x512xi32>
    %42 = arith.select %39, %41, %30 : vector<1x512xi1>, vector<1x512xi32>
    %cst = arith.constant 0.000000e+00 : f32
    %43 = vector.broadcast %cst : f32 to vector<32x512xf32>
    %c17_i32 = arith.constant 17 : i32
    %44 = tpu.dynamic_rotate %4 by %c17_i32 dim 1 : vector<4x512xf32>, i32 -> vector<4x512xf32>
    %c17_i32_18 = arith.constant 17 : i32
    %45 = tpu.dynamic_rotate %9 by %c17_i32_18 dim 1 : vector<8x512xf32>, i32 -> vector<8x512xf32>
    %c1_i32_19 = arith.constant 1 : i32
    %46 = vector.broadcast %c1_i32_19 : i32 to vector<1x512xi32>
    %47 = arith.cmpi sge, %26, %46 : vector<1x512xi32>
    %c16_i32_20 = arith.constant 16 : i32
    %48 = vector.broadcast %c16_i32_20 : i32 to vector<1x512xi32>
    %49 = arith.cmpi sge, %42, %48 : vector<1x512xi32>
    %50 = arith.andi %47, %49 : vector<1x512xi1>
    %cst_21 = arith.constant 0.000000e+00 : f32
    %51 = vector.shape_cast %50 : vector<1x512xi1> to vector<1x512xi1>
    %52 = vector.broadcast %51 : vector<1x512xi1> to vector<4x512xi1>
    %53 = vector.broadcast %cst_21 : f32 to vector<4x512xf32>
    %54 = arith.select %52, %44, %53 : vector<4x512xi1>, vector<4x512xf32>
    %cst_22 = arith.constant 0.000000e+00 : f32
    %55 = vector.shape_cast %50 : vector<1x512xi1> to vector<1x512xi1>
    %56 = vector.broadcast %55 : vector<1x512xi1> to vector<8x512xi1>
    %57 = vector.broadcast %cst_22 : f32 to vector<8x512xf32>
    %58 = arith.select %56, %45, %57 : vector<8x512xi1>, vector<8x512xf32>
    %c0_23 = arith.constant 0 : index
    %c0_24 = arith.constant 0 : index
    %c0_25 = arith.constant 0 : index
    %59 = vector.load %arg4[%c0_23, %c0_24, %c0_25] : memref<9x32x4xf32, #tpu.memory_space<vmem>>, vector<1x32x4xf32>
    %60 = vector.shape_cast %59 : vector<1x32x4xf32> to vector<32x4xf32>
    %cst_26 = arith.constant dense<0.000000e+00> : vector<32x512xf32>
    %61 = tpu.matmul %60, %54, %cst_26 {dimension_numbers = #tpu.dot_dimension_numbers<[1], [0], [0], [1], [0, 0, 1, 1], [], []>} : vector<32x4xf32>, vector<4x512xf32>, vector<32x512xf32> -> vector<32x512xf32>
    %62 = arith.addf %43, %61 : vector<32x512xf32>
    %c0_27 = arith.constant 0 : index
    %c0_28 = arith.constant 0 : index
    %c0_29 = arith.constant 0 : index
    %63 = vector.load %arg5[%c0_27, %c0_28, %c0_29] : memref<9x32x8xf32, #tpu.memory_space<vmem>>, vector<1x32x8xf32>
    %64 = vector.shape_cast %63 : vector<1x32x8xf32> to vector<32x8xf32>
    %cst_30 = arith.constant dense<0.000000e+00> : vector<32x512xf32>
    %65 = tpu.matmul %64, %58, %cst_30 {dimension_numbers = #tpu.dot_dimension_numbers<[1], [0], [0], [1], [0, 0, 1, 1], [], []>} : vector<32x8xf32>, vector<8x512xf32>, vector<32x512xf32> -> vector<32x512xf32>
    %66 = arith.addf %62, %65 : vector<32x512xf32>
    %c16_i32_31 = arith.constant 16 : i32
    %67 = tpu.dynamic_rotate %4 by %c16_i32_31 dim 1 : vector<4x512xf32>, i32 -> vector<4x512xf32>
    %c16_i32_32 = arith.constant 16 : i32
    %68 = tpu.dynamic_rotate %9 by %c16_i32_32 dim 1 : vector<8x512xf32>, i32 -> vector<8x512xf32>
    %c16_i32_33 = arith.constant 16 : i32
    %69 = vector.broadcast %c16_i32_33 : i32 to vector<1x512xi32>
    %70 = arith.cmpi sge, %42, %69 : vector<1x512xi32>
    %cst_34 = arith.constant 0.000000e+00 : f32
    %71 = vector.shape_cast %70 : vector<1x512xi1> to vector<1x512xi1>
    %72 = vector.broadcast %71 : vector<1x512xi1> to vector<4x512xi1>
    %73 = vector.broadcast %cst_34 : f32 to vector<4x512xf32>
    %74 = arith.select %72, %67, %73 : vector<4x512xi1>, vector<4x512xf32>
    %cst_35 = arith.constant 0.000000e+00 : f32
    %75 = vector.shape_cast %70 : vector<1x512xi1> to vector<1x512xi1>
    %76 = vector.broadcast %75 : vector<1x512xi1> to vector<8x512xi1>
    %77 = vector.broadcast %cst_35 : f32 to vector<8x512xf32>
    %78 = arith.select %76, %68, %77 : vector<8x512xi1>, vector<8x512xf32>
    %c1_36 = arith.constant 1 : index
    %c0_37 = arith.constant 0 : index
    %c0_38 = arith.constant 0 : index
    %79 = vector.load %arg4[%c1_36, %c0_37, %c0_38] : memref<9x32x4xf32, #tpu.memory_space<vmem>>, vector<1x32x4xf32>
    %80 = vector.shape_cast %79 : vector<1x32x4xf32> to vector<32x4xf32>
    %cst_39 = arith.constant dense<0.000000e+00> : vector<32x512xf32>
    %81 = tpu.matmul %80, %74, %cst_39 {dimension_numbers = #tpu.dot_dimension_numbers<[1], [0], [0], [1], [0, 0, 1, 1], [], []>} : vector<32x4xf32>, vector<4x512xf32>, vector<32x512xf32> -> vector<32x512xf32>
    %82 = arith.addf %66, %81 : vector<32x512xf32>
    %c1_40 = arith.constant 1 : index
    %c0_41 = arith.constant 0 : index
    %c0_42 = arith.constant 0 : index
    %83 = vector.load %arg5[%c1_40, %c0_41, %c0_42] : memref<9x32x8xf32, #tpu.memory_space<vmem>>, vector<1x32x8xf32>
    %84 = vector.shape_cast %83 : vector<1x32x8xf32> to vector<32x8xf32>
    %cst_43 = arith.constant dense<0.000000e+00> : vector<32x512xf32>
    %85 = tpu.matmul %84, %78, %cst_43 {dimension_numbers = #tpu.dot_dimension_numbers<[1], [0], [0], [1], [0, 0, 1, 1], [], []>} : vector<32x8xf32>, vector<8x512xf32>, vector<32x512xf32> -> vector<32x512xf32>
    %86 = arith.addf %82, %85 : vector<32x512xf32>
    %c15_i32 = arith.constant 15 : i32
    %87 = tpu.dynamic_rotate %4 by %c15_i32 dim 1 : vector<4x512xf32>, i32 -> vector<4x512xf32>
    %c15_i32_44 = arith.constant 15 : i32
    %88 = tpu.dynamic_rotate %9 by %c15_i32_44 dim 1 : vector<8x512xf32>, i32 -> vector<8x512xf32>
    %c15_i32_45 = arith.constant 15 : i32
    %89 = vector.broadcast %c15_i32_45 : i32 to vector<1x512xi32>
    %90 = arith.cmpi slt, %26, %89 : vector<1x512xi32>
    %c16_i32_46 = arith.constant 16 : i32
    %91 = vector.broadcast %c16_i32_46 : i32 to vector<1x512xi32>
    %92 = arith.cmpi sge, %42, %91 : vector<1x512xi32>
    %93 = arith.andi %90, %92 : vector<1x512xi1>
    %cst_47 = arith.constant 0.000000e+00 : f32
    %94 = vector.shape_cast %93 : vector<1x512xi1> to vector<1x512xi1>
    %95 = vector.broadcast %94 : vector<1x512xi1> to vector<4x512xi1>
    %96 = vector.broadcast %cst_47 : f32 to vector<4x512xf32>
    %97 = arith.select %95, %87, %96 : vector<4x512xi1>, vector<4x512xf32>
    %cst_48 = arith.constant 0.000000e+00 : f32
    %98 = vector.shape_cast %93 : vector<1x512xi1> to vector<1x512xi1>
    %99 = vector.broadcast %98 : vector<1x512xi1> to vector<8x512xi1>
    %100 = vector.broadcast %cst_48 : f32 to vector<8x512xf32>
    %101 = arith.select %99, %88, %100 : vector<8x512xi1>, vector<8x512xf32>
    %c2 = arith.constant 2 : index
    %c0_49 = arith.constant 0 : index
    %c0_50 = arith.constant 0 : index
    %102 = vector.load %arg4[%c2, %c0_49, %c0_50] : memref<9x32x4xf32, #tpu.memory_space<vmem>>, vector<1x32x4xf32>
    %103 = vector.shape_cast %102 : vector<1x32x4xf32> to vector<32x4xf32>
    %cst_51 = arith.constant dense<0.000000e+00> : vector<32x512xf32>
    %104 = tpu.matmul %103, %97, %cst_51 {dimension_numbers = #tpu.dot_dimension_numbers<[1], [0], [0], [1], [0, 0, 1, 1], [], []>} : vector<32x4xf32>, vector<4x512xf32>, vector<32x512xf32> -> vector<32x512xf32>
    %105 = arith.addf %86, %104 : vector<32x512xf32>
    %c2_52 = arith.constant 2 : index
    %c0_53 = arith.constant 0 : index
    %c0_54 = arith.constant 0 : index
    %106 = vector.load %arg5[%c2_52, %c0_53, %c0_54] : memref<9x32x8xf32, #tpu.memory_space<vmem>>, vector<1x32x8xf32>
    %107 = vector.shape_cast %106 : vector<1x32x8xf32> to vector<32x8xf32>
    %cst_55 = arith.constant dense<0.000000e+00> : vector<32x512xf32>
    %108 = tpu.matmul %107, %101, %cst_55 {dimension_numbers = #tpu.dot_dimension_numbers<[1], [0], [0], [1], [0, 0, 1, 1], [], []>} : vector<32x8xf32>, vector<8x512xf32>, vector<32x512xf32> -> vector<32x512xf32>
    %109 = arith.addf %105, %108 : vector<32x512xf32>
    %c1_i32_56 = arith.constant 1 : i32
    %110 = tpu.dynamic_rotate %4 by %c1_i32_56 dim 1 : vector<4x512xf32>, i32 -> vector<4x512xf32>
    %c1_i32_57 = arith.constant 1 : i32
    %111 = tpu.dynamic_rotate %9 by %c1_i32_57 dim 1 : vector<8x512xf32>, i32 -> vector<8x512xf32>
    %c1_i32_58 = arith.constant 1 : i32
    %112 = vector.broadcast %c1_i32_58 : i32 to vector<1x512xi32>
    %113 = arith.cmpi sge, %26, %112 : vector<1x512xi32>
    %cst_59 = arith.constant 0.000000e+00 : f32
    %114 = vector.shape_cast %113 : vector<1x512xi1> to vector<1x512xi1>
    %115 = vector.broadcast %114 : vector<1x512xi1> to vector<4x512xi1>
    %116 = vector.broadcast %cst_59 : f32 to vector<4x512xf32>
    %117 = arith.select %115, %110, %116 : vector<4x512xi1>, vector<4x512xf32>
    %cst_60 = arith.constant 0.000000e+00 : f32
    %118 = vector.shape_cast %113 : vector<1x512xi1> to vector<1x512xi1>
    %119 = vector.broadcast %118 : vector<1x512xi1> to vector<8x512xi1>
    %120 = vector.broadcast %cst_60 : f32 to vector<8x512xf32>
    %121 = arith.select %119, %111, %120 : vector<8x512xi1>, vector<8x512xf32>
    %c3 = arith.constant 3 : index
    %c0_61 = arith.constant 0 : index
    %c0_62 = arith.constant 0 : index
    %122 = vector.load %arg4[%c3, %c0_61, %c0_62] : memref<9x32x4xf32, #tpu.memory_space<vmem>>, vector<1x32x4xf32>
    %123 = vector.shape_cast %122 : vector<1x32x4xf32> to vector<32x4xf32>
    %cst_63 = arith.constant dense<0.000000e+00> : vector<32x512xf32>
    %124 = tpu.matmul %123, %117, %cst_63 {dimension_numbers = #tpu.dot_dimension_numbers<[1], [0], [0], [1], [0, 0, 1, 1], [], []>} : vector<32x4xf32>, vector<4x512xf32>, vector<32x512xf32> -> vector<32x512xf32>
    %125 = arith.addf %109, %124 : vector<32x512xf32>
    %c3_64 = arith.constant 3 : index
    %c0_65 = arith.constant 0 : index
    %c0_66 = arith.constant 0 : index
    %126 = vector.load %arg5[%c3_64, %c0_65, %c0_66] : memref<9x32x8xf32, #tpu.memory_space<vmem>>, vector<1x32x8xf32>
    %127 = vector.shape_cast %126 : vector<1x32x8xf32> to vector<32x8xf32>
    %cst_67 = arith.constant dense<0.000000e+00> : vector<32x512xf32>
    %128 = tpu.matmul %127, %121, %cst_67 {dimension_numbers = #tpu.dot_dimension_numbers<[1], [0], [0], [1], [0, 0, 1, 1], [], []>} : vector<32x8xf32>, vector<8x512xf32>, vector<32x512xf32> -> vector<32x512xf32>
    %129 = arith.addf %125, %128 : vector<32x512xf32>
    %c4 = arith.constant 4 : index
    %c0_68 = arith.constant 0 : index
    %c0_69 = arith.constant 0 : index
    %130 = vector.load %arg4[%c4, %c0_68, %c0_69] : memref<9x32x4xf32, #tpu.memory_space<vmem>>, vector<1x32x4xf32>
    %131 = vector.shape_cast %130 : vector<1x32x4xf32> to vector<32x4xf32>
    %cst_70 = arith.constant dense<0.000000e+00> : vector<32x512xf32>
    %132 = tpu.matmul %131, %4, %cst_70 {dimension_numbers = #tpu.dot_dimension_numbers<[1], [0], [0], [1], [0, 0, 1, 1], [], []>} : vector<32x4xf32>, vector<4x512xf32>, vector<32x512xf32> -> vector<32x512xf32>
    %133 = arith.addf %129, %132 : vector<32x512xf32>
    %c4_71 = arith.constant 4 : index
    %c0_72 = arith.constant 0 : index
    %c0_73 = arith.constant 0 : index
    %134 = vector.load %arg5[%c4_71, %c0_72, %c0_73] : memref<9x32x8xf32, #tpu.memory_space<vmem>>, vector<1x32x8xf32>
    %135 = vector.shape_cast %134 : vector<1x32x8xf32> to vector<32x8xf32>
    %cst_74 = arith.constant dense<0.000000e+00> : vector<32x512xf32>
    %136 = tpu.matmul %135, %9, %cst_74 {dimension_numbers = #tpu.dot_dimension_numbers<[1], [0], [0], [1], [0, 0, 1, 1], [], []>} : vector<32x8xf32>, vector<8x512xf32>, vector<32x512xf32> -> vector<32x512xf32>
    %137 = arith.addf %133, %136 : vector<32x512xf32>
    %c511_i32 = arith.constant 511 : i32
    %138 = tpu.dynamic_rotate %4 by %c511_i32 dim 1 : vector<4x512xf32>, i32 -> vector<4x512xf32>
    %c511_i32_75 = arith.constant 511 : i32
    %139 = tpu.dynamic_rotate %9 by %c511_i32_75 dim 1 : vector<8x512xf32>, i32 -> vector<8x512xf32>
    %c15_i32_76 = arith.constant 15 : i32
    %140 = vector.broadcast %c15_i32_76 : i32 to vector<1x512xi32>
    %141 = arith.cmpi slt, %26, %140 : vector<1x512xi32>
    %cst_77 = arith.constant 0.000000e+00 : f32
    %142 = vector.shape_cast %141 : vector<1x512xi1> to vector<1x512xi1>
    %143 = vector.broadcast %142 : vector<1x512xi1> to vector<4x512xi1>
    %144 = vector.broadcast %cst_77 : f32 to vector<4x512xf32>
    %145 = arith.select %143, %138, %144 : vector<4x512xi1>, vector<4x512xf32>
    %cst_78 = arith.constant 0.000000e+00 : f32
    %146 = vector.shape_cast %141 : vector<1x512xi1> to vector<1x512xi1>
    %147 = vector.broadcast %146 : vector<1x512xi1> to vector<8x512xi1>
    %148 = vector.broadcast %cst_78 : f32 to vector<8x512xf32>
    %149 = arith.select %147, %139, %148 : vector<8x512xi1>, vector<8x512xf32>
    %c5 = arith.constant 5 : index
    %c0_79 = arith.constant 0 : index
    %c0_80 = arith.constant 0 : index
    %150 = vector.load %arg4[%c5, %c0_79, %c0_80] : memref<9x32x4xf32, #tpu.memory_space<vmem>>, vector<1x32x4xf32>
    %151 = vector.shape_cast %150 : vector<1x32x4xf32> to vector<32x4xf32>
    %cst_81 = arith.constant dense<0.000000e+00> : vector<32x512xf32>
    %152 = tpu.matmul %151, %145, %cst_81 {dimension_numbers = #tpu.dot_dimension_numbers<[1], [0], [0], [1], [0, 0, 1, 1], [], []>} : vector<32x4xf32>, vector<4x512xf32>, vector<32x512xf32> -> vector<32x512xf32>
    %153 = arith.addf %137, %152 : vector<32x512xf32>
    %c5_82 = arith.constant 5 : index
    %c0_83 = arith.constant 0 : index
    %c0_84 = arith.constant 0 : index
    %154 = vector.load %arg5[%c5_82, %c0_83, %c0_84] : memref<9x32x8xf32, #tpu.memory_space<vmem>>, vector<1x32x8xf32>
    %155 = vector.shape_cast %154 : vector<1x32x8xf32> to vector<32x8xf32>
    %cst_85 = arith.constant dense<0.000000e+00> : vector<32x512xf32>
    %156 = tpu.matmul %155, %149, %cst_85 {dimension_numbers = #tpu.dot_dimension_numbers<[1], [0], [0], [1], [0, 0, 1, 1], [], []>} : vector<32x8xf32>, vector<8x512xf32>, vector<32x512xf32> -> vector<32x512xf32>
    %157 = arith.addf %153, %156 : vector<32x512xf32>
    %c497_i32 = arith.constant 497 : i32
    %158 = tpu.dynamic_rotate %4 by %c497_i32 dim 1 : vector<4x512xf32>, i32 -> vector<4x512xf32>
    %c497_i32_86 = arith.constant 497 : i32
    %159 = tpu.dynamic_rotate %9 by %c497_i32_86 dim 1 : vector<8x512xf32>, i32 -> vector<8x512xf32>
    %c1_i32_87 = arith.constant 1 : i32
    %160 = vector.broadcast %c1_i32_87 : i32 to vector<1x512xi32>
    %161 = arith.cmpi sge, %26, %160 : vector<1x512xi32>
    %c240_i32 = arith.constant 240 : i32
    %162 = vector.broadcast %c240_i32 : i32 to vector<1x512xi32>
    %163 = arith.cmpi slt, %42, %162 : vector<1x512xi32>
    %164 = arith.andi %161, %163 : vector<1x512xi1>
    %cst_88 = arith.constant 0.000000e+00 : f32
    %165 = vector.shape_cast %164 : vector<1x512xi1> to vector<1x512xi1>
    %166 = vector.broadcast %165 : vector<1x512xi1> to vector<4x512xi1>
    %167 = vector.broadcast %cst_88 : f32 to vector<4x512xf32>
    %168 = arith.select %166, %158, %167 : vector<4x512xi1>, vector<4x512xf32>
    %cst_89 = arith.constant 0.000000e+00 : f32
    %169 = vector.shape_cast %164 : vector<1x512xi1> to vector<1x512xi1>
    %170 = vector.broadcast %169 : vector<1x512xi1> to vector<8x512xi1>
    %171 = vector.broadcast %cst_89 : f32 to vector<8x512xf32>
    %172 = arith.select %170, %159, %171 : vector<8x512xi1>, vector<8x512xf32>
    %c6 = arith.constant 6 : index
    %c0_90 = arith.constant 0 : index
    %c0_91 = arith.constant 0 : index
    %173 = vector.load %arg4[%c6, %c0_90, %c0_91] : memref<9x32x4xf32, #tpu.memory_space<vmem>>, vector<1x32x4xf32>
    %174 = vector.shape_cast %173 : vector<1x32x4xf32> to vector<32x4xf32>
    %cst_92 = arith.constant dense<0.000000e+00> : vector<32x512xf32>
    %175 = tpu.matmul %174, %168, %cst_92 {dimension_numbers = #tpu.dot_dimension_numbers<[1], [0], [0], [1], [0, 0, 1, 1], [], []>} : vector<32x4xf32>, vector<4x512xf32>, vector<32x512xf32> -> vector<32x512xf32>
    %176 = arith.addf %157, %175 : vector<32x512xf32>
    %c6_93 = arith.constant 6 : index
    %c0_94 = arith.constant 0 : index
    %c0_95 = arith.constant 0 : index
    %177 = vector.load %arg5[%c6_93, %c0_94, %c0_95] : memref<9x32x8xf32, #tpu.memory_space<vmem>>, vector<1x32x8xf32>
    %178 = vector.shape_cast %177 : vector<1x32x8xf32> to vector<32x8xf32>
    %cst_96 = arith.constant dense<0.000000e+00> : vector<32x512xf32>
    %179 = tpu.matmul %178, %172, %cst_96 {dimension_numbers = #tpu.dot_dimension_numbers<[1], [0], [0], [1], [0, 0, 1, 1], [], []>} : vector<32x8xf32>, vector<8x512xf32>, vector<32x512xf32> -> vector<32x512xf32>
    %180 = arith.addf %176, %179 : vector<32x512xf32>
    %c496_i32 = arith.constant 496 : i32
    %181 = tpu.dynamic_rotate %4 by %c496_i32 dim 1 : vector<4x512xf32>, i32 -> vector<4x512xf32>
    %c496_i32_97 = arith.constant 496 : i32
    %182 = tpu.dynamic_rotate %9 by %c496_i32_97 dim 1 : vector<8x512xf32>, i32 -> vector<8x512xf32>
    %c240_i32_98 = arith.constant 240 : i32
    %183 = vector.broadcast %c240_i32_98 : i32 to vector<1x512xi32>
    %184 = arith.cmpi slt, %42, %183 : vector<1x512xi32>
    %cst_99 = arith.constant 0.000000e+00 : f32
    %185 = vector.shape_cast %184 : vector<1x512xi1> to vector<1x512xi1>
    %186 = vector.broadcast %185 : vector<1x512xi1> to vector<4x512xi1>
    %187 = vector.broadcast %cst_99 : f32 to vector<4x512xf32>
    %188 = arith.select %186, %181, %187 : vector<4x512xi1>, vector<4x512xf32>
    %cst_100 = arith.constant 0.000000e+00 : f32
    %189 = vector.shape_cast %184 : vector<1x512xi1> to vector<1x512xi1>
    %190 = vector.broadcast %189 : vector<1x512xi1> to vector<8x512xi1>
    %191 = vector.broadcast %cst_100 : f32 to vector<8x512xf32>
    %192 = arith.select %190, %182, %191 : vector<8x512xi1>, vector<8x512xf32>
    %c7 = arith.constant 7 : index
    %c0_101 = arith.constant 0 : index
    %c0_102 = arith.constant 0 : index
    %193 = vector.load %arg4[%c7, %c0_101, %c0_102] : memref<9x32x4xf32, #tpu.memory_space<vmem>>, vector<1x32x4xf32>
    %194 = vector.shape_cast %193 : vector<1x32x4xf32> to vector<32x4xf32>
    %cst_103 = arith.constant dense<0.000000e+00> : vector<32x512xf32>
    %195 = tpu.matmul %194, %188, %cst_103 {dimension_numbers = #tpu.dot_dimension_numbers<[1], [0], [0], [1], [0, 0, 1, 1], [], []>} : vector<32x4xf32>, vector<4x512xf32>, vector<32x512xf32> -> vector<32x512xf32>
    %196 = arith.addf %180, %195 : vector<32x512xf32>
    %c7_104 = arith.constant 7 : index
    %c0_105 = arith.constant 0 : index
    %c0_106 = arith.constant 0 : index
    %197 = vector.load %arg5[%c7_104, %c0_105, %c0_106] : memref<9x32x8xf32, #tpu.memory_space<vmem>>, vector<1x32x8xf32>
    %198 = vector.shape_cast %197 : vector<1x32x8xf32> to vector<32x8xf32>
    %cst_107 = arith.constant dense<0.000000e+00> : vector<32x512xf32>
    %199 = tpu.matmul %198, %192, %cst_107 {dimension_numbers = #tpu.dot_dimension_numbers<[1], [0], [0], [1], [0, 0, 1, 1], [], []>} : vector<32x8xf32>, vector<8x512xf32>, vector<32x512xf32> -> vector<32x512xf32>
    %200 = arith.addf %196, %199 : vector<32x512xf32>
    %c495_i32 = arith.constant 495 : i32
    %201 = tpu.dynamic_rotate %4 by %c495_i32 dim 1 : vector<4x512xf32>, i32 -> vector<4x512xf32>
    %c495_i32_108 = arith.constant 495 : i32
    %202 = tpu.dynamic_rotate %9 by %c495_i32_108 dim 1 : vector<8x512xf32>, i32 -> vector<8x512xf32>
    %c15_i32_109 = arith.constant 15 : i32
    %203 = vector.broadcast %c15_i32_109 : i32 to vector<1x512xi32>
    %204 = arith.cmpi slt, %26, %203 : vector<1x512xi32>
    %c240_i32_110 = arith.constant 240 : i32
    %205 = vector.broadcast %c240_i32_110 : i32 to vector<1x512xi32>
    %206 = arith.cmpi slt, %42, %205 : vector<1x512xi32>
    %207 = arith.andi %204, %206 : vector<1x512xi1>
    %cst_111 = arith.constant 0.000000e+00 : f32
    %208 = vector.shape_cast %207 : vector<1x512xi1> to vector<1x512xi1>
    %209 = vector.broadcast %208 : vector<1x512xi1> to vector<4x512xi1>
    %210 = vector.broadcast %cst_111 : f32 to vector<4x512xf32>
    %211 = arith.select %209, %201, %210 : vector<4x512xi1>, vector<4x512xf32>
    %cst_112 = arith.constant 0.000000e+00 : f32
    %212 = vector.shape_cast %207 : vector<1x512xi1> to vector<1x512xi1>
    %213 = vector.broadcast %212 : vector<1x512xi1> to vector<8x512xi1>
    %214 = vector.broadcast %cst_112 : f32 to vector<8x512xf32>
    %215 = arith.select %213, %202, %214 : vector<8x512xi1>, vector<8x512xf32>
    %c8 = arith.constant 8 : index
    %c0_113 = arith.constant 0 : index
    %c0_114 = arith.constant 0 : index
    %216 = vector.load %arg4[%c8, %c0_113, %c0_114] : memref<9x32x4xf32, #tpu.memory_space<vmem>>, vector<1x32x4xf32>
    %217 = vector.shape_cast %216 : vector<1x32x4xf32> to vector<32x4xf32>
    %cst_115 = arith.constant dense<0.000000e+00> : vector<32x512xf32>
    %218 = tpu.matmul %217, %211, %cst_115 {dimension_numbers = #tpu.dot_dimension_numbers<[1], [0], [0], [1], [0, 0, 1, 1], [], []>} : vector<32x4xf32>, vector<4x512xf32>, vector<32x512xf32> -> vector<32x512xf32>
    %219 = arith.addf %200, %218 : vector<32x512xf32>
    %c8_116 = arith.constant 8 : index
    %c0_117 = arith.constant 0 : index
    %c0_118 = arith.constant 0 : index
    %220 = vector.load %arg5[%c8_116, %c0_117, %c0_118] : memref<9x32x8xf32, #tpu.memory_space<vmem>>, vector<1x32x8xf32>
    %221 = vector.shape_cast %220 : vector<1x32x8xf32> to vector<32x8xf32>
    %cst_119 = arith.constant dense<0.000000e+00> : vector<32x512xf32>
    %222 = tpu.matmul %221, %215, %cst_119 {dimension_numbers = #tpu.dot_dimension_numbers<[1], [0], [0], [1], [0, 0, 1, 1], [], []>} : vector<32x8xf32>, vector<8x512xf32>, vector<32x512xf32> -> vector<32x512xf32>
    %223 = arith.addf %219, %222 : vector<32x512xf32>
    %c0_120 = arith.constant 0 : index
    %c0_121 = arith.constant 0 : index
    %224 = vector.load %arg6[%c0_120, %c0_121] : memref<32x1xf32, #tpu.memory_space<vmem>>, vector<32x1xf32>
    %225 = vector.broadcast %224 : vector<32x1xf32> to vector<32x512xf32>
    %226 = arith.addf %223, %225 : vector<32x512xf32>
    %227 = vector.extract_strided_slice %226 {offsets = [0, 0], sizes = [24, 512], strides = [1, 1]} : vector<32x512xf32> to vector<24x512xf32>
    %228 = arith.negf %227 : vector<24x512xf32>
    %229 = math.exp %228 : vector<24x512xf32>
    %cst_122 = arith.constant 1.000000e+00 : f32
    %230 = vector.broadcast %cst_122 : f32 to vector<24x512xf32>
    %231 = arith.addf %230, %229 : vector<24x512xf32>
    %232 = arith.divf %230, %231 : vector<24x512xf32>
    %233 = vector.extract_strided_slice %232 {offsets = [0, 0], sizes = [8, 512], strides = [1, 1]} : vector<24x512xf32> to vector<8x512xf32>
    %234 = vector.extract_strided_slice %232 {offsets = [8, 0], sizes = [8, 512], strides = [1, 1]} : vector<24x512xf32> to vector<8x512xf32>
    %235 = vector.extract_strided_slice %232 {offsets = [16, 0], sizes = [8, 512], strides = [1, 1]} : vector<24x512xf32> to vector<8x512xf32>
    %236 = vector.extract_strided_slice %226 {offsets = [24, 0], sizes = [8, 512], strides = [1, 1]} : vector<32x512xf32> to vector<8x512xf32>
    %237 = math.tanh %236 : vector<8x512xf32>
    %c0_123 = arith.constant 0 : index
    %c0_124 = arith.constant 0 : index
    %c0_125 = arith.constant 0 : index
    %238 = vector.load %arg3[%c0_123, %c0_124, %c0_125] : memref<2x8x256xf32, #tpu.memory_space<vmem>>, vector<1x8x256xf32>
    %239 = vector.shape_cast %238 : vector<1x8x256xf32> to vector<8x256xf32>
    %c1_126 = arith.constant 1 : index
    %c0_127 = arith.constant 0 : index
    %c0_128 = arith.constant 0 : index
    %240 = vector.load %arg3[%c1_126, %c0_127, %c0_128] : memref<2x8x256xf32, #tpu.memory_space<vmem>>, vector<1x8x256xf32>
    %241 = vector.shape_cast %240 : vector<1x8x256xf32> to vector<8x256xf32>
    %242 = tpu.concatenate %239, %241 in 1 : vector<8x256xf32>, vector<8x256xf32> -> vector<8x512xf32>
    %243 = arith.mulf %234, %242 : vector<8x512xf32>
    %244 = arith.mulf %233, %237 : vector<8x512xf32>
    %245 = arith.addf %243, %244 : vector<8x512xf32>
    %246 = math.tanh %245 : vector<8x512xf32>
    %247 = arith.mulf %235, %246 : vector<8x512xf32>
    %248 = vector.extract_strided_slice %247 {offsets = [0, 0], sizes = [8, 256], strides = [1, 1]} : vector<8x512xf32> to vector<8x256xf32>
    %c0_129 = arith.constant 0 : index
    %c0_130 = arith.constant 0 : index
    %c0_131 = arith.constant 0 : index
    %249 = vector.load %arg7[%c0_129, %c0_130, %c0_131] : memref<2x8x256xf32, #tpu.memory_space<vmem>>, vector<1x8x256xf32>
    %250 = vector.shape_cast %249 : vector<1x8x256xf32> to vector<8x256xf32>
    %251 = vector.shape_cast %248 : vector<8x256xf32> to vector<1x8x256xf32>
    tpu.vector_store %arg7[%c0_129, %c0_130, %c0_131], %251 {strides = array<i32>} : memref<2x8x256xf32, #tpu.memory_space<vmem>>, vector<1x8x256xf32>,
    %252 = vector.extract_strided_slice %245 {offsets = [0, 0], sizes = [8, 256], strides = [1, 1]} : vector<8x512xf32> to vector<8x256xf32>
    %c0_132 = arith.constant 0 : index
    %c0_133 = arith.constant 0 : index
    %c0_134 = arith.constant 0 : index
    %253 = vector.load %arg8[%c0_132, %c0_133, %c0_134] : memref<2x8x256xf32, #tpu.memory_space<vmem>>, vector<1x8x256xf32>
    %254 = vector.shape_cast %253 : vector<1x8x256xf32> to vector<8x256xf32>
    %255 = vector.shape_cast %252 : vector<8x256xf32> to vector<1x8x256xf32>
    tpu.vector_store %arg8[%c0_132, %c0_133, %c0_134], %255 {strides = array<i32>} : memref<2x8x256xf32, #tpu.memory_space<vmem>>, vector<1x8x256xf32>,
    %256 = vector.extract_strided_slice %247 {offsets = [0, 256], sizes = [8, 256], strides = [1, 1]} : vector<8x512xf32> to vector<8x256xf32>
    %c1_135 = arith.constant 1 : index
    %c0_136 = arith.constant 0 : index
    %c0_137 = arith.constant 0 : index
    %257 = vector.load %arg7[%c1_135, %c0_136, %c0_137] : memref<2x8x256xf32, #tpu.memory_space<vmem>>, vector<1x8x256xf32>
    %258 = vector.shape_cast %257 : vector<1x8x256xf32> to vector<8x256xf32>
    %259 = vector.shape_cast %256 : vector<8x256xf32> to vector<1x8x256xf32>
    tpu.vector_store %arg7[%c1_135, %c0_136, %c0_137], %259 {strides = array<i32>} : memref<2x8x256xf32, #tpu.memory_space<vmem>>, vector<1x8x256xf32>,
    %260 = vector.extract_strided_slice %245 {offsets = [0, 256], sizes = [8, 256], strides = [1, 1]} : vector<8x512xf32> to vector<8x256xf32>
    %c1_138 = arith.constant 1 : index
    %c0_139 = arith.constant 0 : index
    %c0_140 = arith.constant 0 : index
    %261 = vector.load %arg8[%c1_138, %c0_139, %c0_140] : memref<2x8x256xf32, #tpu.memory_space<vmem>>, vector<1x8x256xf32>
    %262 = vector.shape_cast %261 : vector<1x8x256xf32> to vector<8x256xf32>
    %263 = vector.shape_cast %260 : vector<8x256xf32> to vector<1x8x256xf32>
    tpu.vector_store %arg8[%c1_138, %c0_139, %c0_140], %263 {strides = array<i32>} : memref<2x8x256xf32, #tpu.memory_space<vmem>>, vector<1x8x256xf32>,
    return
  }
  func.func @transform_0(%arg0: i32) -> (i32, i32, i32) {
    %c0_i32 = arith.constant 0 : i32
    %c0_i32_0 = arith.constant 0 : i32
    %c0_i32_1 = arith.constant 0 : i32
    return %arg0, %c0_i32, %c0_i32_0 : i32, i32, i32
  }
  func.func @transform_1(%arg0: i32) -> (i32, i32, i32) {
    %c0_i32 = arith.constant 0 : i32
    %c0_i32_0 = arith.constant 0 : i32
    %c0_i32_1 = arith.constant 0 : i32
    return %arg0, %c0_i32, %c0_i32_0 : i32, i32, i32
  }
  func.func @transform_2(%arg0: i32) -> (i32, i32, i32) {
    %c0_i32 = arith.constant 0 : i32
    %c0_i32_0 = arith.constant 0 : i32
    %c0_i32_1 = arith.constant 0 : i32
    return %arg0, %c0_i32, %c0_i32_0 : i32, i32, i32
  }
  func.func @transform_3(%arg0: i32) -> (i32, i32, i32) {
    %c0_i32 = arith.constant 0 : i32
    %c0_i32_0 = arith.constant 0 : i32
    %c0_i32_1 = arith.constant 0 : i32
    %c0_i32_2 = arith.constant 0 : i32
    return %c0_i32, %c0_i32_0, %c0_i32_1 : i32, i32, i32
  }
  func.func @transform_4(%arg0: i32) -> (i32, i32, i32) {
    %c0_i32 = arith.constant 0 : i32
    %c0_i32_0 = arith.constant 0 : i32
    %c0_i32_1 = arith.constant 0 : i32
    %c0_i32_2 = arith.constant 0 : i32
    return %c0_i32, %c0_i32_0, %c0_i32_1 : i32, i32, i32
  }
  func.func @transform_5(%arg0: i32) -> (i32, i32) {
    %c0_i32 = arith.constant 0 : i32
    %c0_i32_0 = arith.constant 0 : i32
    %c0_i32_1 = arith.constant 0 : i32
    return %c0_i32, %c0_i32_0 : i32, i32
  }
  func.func @transform_6(%arg0: i32) -> (i32, i32, i32) {
    %c0_i32 = arith.constant 0 : i32
    %c0_i32_0 = arith.constant 0 : i32
    %c0_i32_1 = arith.constant 0 : i32
    return %arg0, %c0_i32, %c0_i32_0 : i32, i32, i32
  }
  func.func @transform_7(%arg0: i32) -> (i32, i32, i32) {
    %c0_i32 = arith.constant 0 : i32
    %c0_i32_0 = arith.constant 0 : i32
    %c0_i32_1 = arith.constant 0 : i32
    return %arg0, %c0_i32, %c0_i32_0 : i32, i32, i32
  }
}

</mosaic_0001>

<bundles_post_ra>
// kernel: conv_lstm_cell.1
= control target key start
LH: loop header
LB: loop body
LE: loop exit
PB: predicated region body
PF: predicated region fallthrough
CT: control target
= control target key end

     0   :  { %v5173_v2 = vmov 0.0   ;;  %s5174_s28 = smov 17   ;;  %s5177_s14 = smov 1   ;;  %v39_v9 = vlaneseq  ;;  %vm6365_vm9 = vcmask 64512   ;;  %vm6364_vm10 = vcmask 1043456   ;;  %s6356_s1 = inlined_call_operand.vmem [shape: f32[2,8,256], index: 1, kind: input, shape index: {}]   ;;  %s6357_s0 = inlined_call_operand.vmem [shape: f32[2,4,256], index: 0, kind: input, shape index: {}]   ;;  %s6358_s4 = inlined_call_operand.vmem [shape: f32[9,32,8], index: 4, kind: input, shape index: {}]   ;;  %s6359_s3 = inlined_call_operand.vmem [shape: f32[9,32,4], index: 3, kind: input, shape index: {}]   ;;  %s6360_s5 = inlined_call_operand.vmem [shape: f32[32,1], index: 5, kind: input, shape index: {}]   ;;  %s6361_s2 = inlined_call_operand.vmem [shape: f32[2,8,256], index: 2, kind: input, shape index: {}]   ;;  %s6362_s7 = inlined_call_operand.vmem [shape: f32[2,8,256], index: 7, kind: output, shape index: {1}]   ;;  %s6363_s6 = inlined_call_operand.vmem [shape: f32[2,8,256], index: 6, kind: output, shape index: {0}]  }
   0x1   :  { %v5226_v0 = vld [vmem:[%s6356_s1 + $0x10] sm:$0xff]  ;;  %v5231_v1 = vld [vmem:[%s6356_s1] sm:$0xff]  ;;  %278 = vmatprep.mubr.f32.mxu0 %v5173_v2  ;;  %367 = vmatprep.mubr.f32.mxu1 %v5173_v2  ;;  %v5240_v3 = vld [vmem:[%s6356_s1 + $0x18] sm:$0xff]  ;;  %s5178_s15 = smov 127   ;;  %s5179_s16 = smov 113   ;;  %vm6366_vm12 = vcmask 31744  }
   0x2   :  { %157 = vrot.lane.b32.xlu1 %v5226_v0, %s5174_s28  ;;  %153 = vrot.lane.b32.xlu0 %v5231_v1, %s5174_s28  ;;  %v5245_v4 = vld [vmem:[%s6356_s1 + $0x8] sm:$0xff]  ;;  %v5250_v5 = vld [vmem:[%s6357_s0] sm:$0xff]  ;;  %s5175_s1 = smov 16   ;;  %s5180_s17 = smov 112   ;;  %v5315_v10 = vand.u32 127, %v39_v9 }
   0x3   :  { %v5256_v6 = vcombine.high %v5250_v5, %v5250_v5  ;;  %v5261_v7 = vld [vmem:[%s6357_s0 + $0x8] sm:$0xff]  ;;  %s5176_s0 = smov 15   ;;  %s5181_s18 = smov 111   ;;  %v197_v34 = vld [vmem:[%s6358_s4] sm:$0xff]  ;;  %v199_v45 = vld [vmem:[%s6358_s4 + $0x10] sm:$0xff] }
   0x4   :  { %v5267_v8 = vcombine.high %v5261_v7, %v5261_v7  ;;  %v5320_v11 = vadd.s32 256, %v5315_v10  ;;  %v5325_v12 = vadd.s32 128, %v5315_v10  ;;  %v5328_v13 = vadd.s32 384, %v5315_v10  ;;  %v198_v38 = vld [vmem:[%s6358_s4 + $0x8] sm:$0xff]  ;;  %v200_v51 = vld [vmem:[%s6358_s4 + $0x18] sm:$0xff]  ;;  %v193_v55 = vld [vmem:[%s6359_s3] sm:$0xff] }
   0x5   :  { %v48_v14 = vand.u32 15, %v5315_v10  ;;  %v96_v15 = vand.u32 255, %v5315_v10  ;;  %vm148_vm4 = vcmp.lt.s32.totalorder %v5315_v10, 17  ;;  %vm604_vm11 = vcmp.lt.s32.totalorder %v5315_v10, 16  ;;  %v194_v63 = vld [vmem:[%s6359_s3 + $0x8] sm:$0xff]  ;;  %v4589_v23 = vld [vmem:[%s6359_s3 + $0x50] sm:$0xff] }
   0x6   :  { %159 = vrot.lane.b32.xlu1 %v5240_v3, %s5174_s28  ;;  %155 = vrot.lane.b32.xlu0 %v5245_v4, %s5174_s28  ;;  %v62_v16 = vand.u32 15, %v5320_v11  ;;  %v110_v17 = vand.u32 255, %v5320_v11  ;;  %v55_v18 = vand.u32 15, %v5325_v12  ;;  %v69_v19 = vand.u32 15, %v5328_v13  ;;  %v4697_v26 = vld [vmem:[%s6358_s4 + $0xb0] sm:$0xff]  ;;  %v4698_v27 = vld [vmem:[%s6358_s4 + $0xb8] sm:$0xff] }
   0x7   :  { %vm5338_vm0 = vcmp.ge.s32.totalorder %v48_v14, 1  ;;  %vm5342_vm1 = vcmp.ge.s32.totalorder %v96_v15, 16  ;;  %vm1079_vm13 = vcmp.lt.s32.totalorder %v5315_v10, 15  ;;  %v4713_v22 = vld [vmem:[%s6359_s3 + $0xd0] sm:$0xff]  ;;  %v4714_v24 = vld [vmem:[%s6359_s3 + $0xd8] sm:$0xff] }
   0x8   :  { %vm5348_vm2 = vcmp.ge.s32.totalorder %v62_v16, 1  ;;  %vm5352_vm3 = vcmp.ge.s32.totalorder %v110_v17, 16  ;;  %vm5363_vm5 = vcmp.ge.s32.totalorder %v55_v18, 1  ;;  %vm5369_vm6 = vcmp.ge.s32.totalorder %v69_v19, 1  ;;  %vm173_vm7 = vmand %vm5338_vm0, %vm5342_vm1 }
   0x9   :  { %vm175_vm8 = vmand %vm5348_vm2, %vm5352_vm3  ;;  %vm5524_vm14 = vcmp.lt.s32.totalorder %v55_v18, 15  ;;  %vm5532_vm15 = vcmp.lt.s32.totalorder %v69_v19, 15 }
   0xa   :  { %140 = vrot.lane.b32.xlu0 %v5250_v5, %s5174_s28  ;;  %142 = vrot.lane.b32.xlu1 %v5256_v6, %s5174_s28 }
   0xe   :  { %144 = vrot.lane.b32.xlu0 %v5261_v7, %s5174_s28  ;;  %146 = vrot.lane.b32.xlu1 %v5267_v8, %s5174_s28 }
  0x12   :  { %596 = vrot.lane.b32.xlu0 %v5250_v5, %s5175_s1  ;;  %598 = vrot.lane.b32.xlu1 %v5256_v6, %s5175_s1 }
  0x16   :  { %600 = vrot.lane.b32.xlu0 %v5261_v7, %s5175_s1  ;;  %602 = vrot.lane.b32.xlu1 %v5267_v8, %s5175_s1 }
  0x1a   :  { %609 = vrot.lane.b32.xlu0 %v5231_v1, %s5175_s1  ;;  %611 = vrot.lane.b32.xlu1 %v5245_v4, %s5175_s1 }
  0x1e   :  { %613 = vrot.lane.b32.xlu0 %v5226_v0, %s5175_s1  ;;  %615 = vrot.lane.b32.xlu1 %v5240_v3, %s5175_s1 }
  0x22   :  { %1071 = vrot.lane.b32.xlu0 %v5250_v5, %s5176_s0  ;;  %1073 = vrot.lane.b32.xlu1 %v5256_v6, %s5176_s0 }
  0x26   :  { %1075 = vrot.lane.b32.xlu0 %v5261_v7, %s5176_s0  ;;  %1077 = vrot.lane.b32.xlu1 %v5267_v8, %s5176_s0 }
  0x2a   :  { %1084 = vrot.lane.b32.xlu0 %v5231_v1, %s5176_s0  ;;  %1086 = vrot.lane.b32.xlu1 %v5245_v4, %s5176_s0 }
  0x2e   :  { %1088 = vrot.lane.b32.xlu0 %v5226_v0, %s5176_s0  ;;  %1090 = vrot.lane.b32.xlu1 %v5240_v3, %s5176_s0 }
  0x32   :  { %1554 = vrot.lane.b32.xlu0 %v5250_v5, %s5177_s14  ;;  %1556 = vrot.lane.b32.xlu1 %v5256_v6, %s5177_s14 }
  0x36   :  { %1558 = vrot.lane.b32.xlu0 %v5261_v7, %s5177_s14  ;;  %1560 = vrot.lane.b32.xlu1 %v5267_v8, %s5177_s14 }
  0x3a   :  { %1567 = vrot.lane.b32.xlu0 %v5231_v1, %s5177_s14  ;;  %1569 = vrot.lane.b32.xlu1 %v5245_v4, %s5177_s14 }
  0x3e   :  { %1571 = vrot.lane.b32.xlu0 %v5226_v0, %s5177_s14  ;;  %1573 = vrot.lane.b32.xlu1 %v5240_v3, %s5177_s14 }
  0x42   :  { %2459 = vrot.lane.b32.xlu0 %v5250_v5, %s5178_s15  ;;  %2461 = vrot.lane.b32.xlu1 %v5256_v6, %s5178_s15 }
  0x46   :  { %2463 = vrot.lane.b32.xlu0 %v5261_v7, %s5178_s15  ;;  %2465 = vrot.lane.b32.xlu1 %v5267_v8, %s5178_s15 }
  0x4a   :  { %2472 = vrot.lane.b32.xlu0 %v5231_v1, %s5178_s15  ;;  %2474 = vrot.lane.b32.xlu1 %v5245_v4, %s5178_s15 }
  0x4e   :  { %2476 = vrot.lane.b32.xlu0 %v5226_v0, %s5178_s15  ;;  %2478 = vrot.lane.b32.xlu1 %v5240_v3, %s5178_s15 }
  0x52   :  { %2934 = vrot.lane.b32.xlu0 %v5250_v5, %s5179_s16  ;;  %2936 = vrot.lane.b32.xlu1 %v5256_v6, %s5179_s16 }
  0x56   :  { %2938 = vrot.lane.b32.xlu0 %v5261_v7, %s5179_s16  ;;  %2940 = vrot.lane.b32.xlu1 %v5267_v8, %s5179_s16 }
  0x5a   :  { %2947 = vrot.lane.b32.xlu0 %v5231_v1, %s5179_s16  ;;  %2949 = vrot.lane.b32.xlu1 %v5245_v4, %s5179_s16 }
  0x5e   :  { %2951 = vrot.lane.b32.xlu0 %v5226_v0, %s5179_s16  ;;  %2953 = vrot.lane.b32.xlu1 %v5240_v3, %s5179_s16 }
  0x62   :  { %3417 = vrot.lane.b32.xlu0 %v5250_v5, %s5180_s17  ;;  %3419 = vrot.lane.b32.xlu1 %v5256_v6, %s5180_s17 }
  0x66   :  { %3421 = vrot.lane.b32.xlu0 %v5261_v7, %s5180_s17  ;;  %3423 = vrot.lane.b32.xlu1 %v5267_v8, %s5180_s17 }
  0x6a   :  { %3430 = vrot.lane.b32.xlu0 %v5231_v1, %s5180_s17  ;;  %3432 = vrot.lane.b32.xlu1 %v5245_v4, %s5180_s17 }
  0x6e   :  { %3434 = vrot.lane.b32.xlu0 %v5226_v0, %s5180_s17  ;;  %3436 = vrot.lane.b32.xlu1 %v5240_v3, %s5180_s17 }
  0x72   :  { %3892 = vrot.lane.b32.xlu0 %v5250_v5, %s5181_s18  ;;  %3894 = vrot.lane.b32.xlu1 %v5256_v6, %s5181_s18 }
  0x74   :  { %v158_v20 = vpop.permute.xlu1 %157  ;;  %v154_v21 = vpop.permute.xlu0 %153 }
  0x76   :  { %3896 = vrot.lane.b32.xlu0 %v5261_v7, %s5181_s18  ;;  %3898 = vrot.lane.b32.xlu1 %v5267_v8, %s5181_s18 }
  0x78   :  { %v160_v28 = vpop.permute.xlu1 %159  ;;  %v156_v29 = vpop.permute.xlu0 %155 }
  0x79   :  { %v163_v30 = vsel %vm148_vm4, %v154_v21, %v156_v29  ;;  %v161_v31 = vsel %vm148_vm4, %v158_v20, %v160_v28  ;;  %v164_v32 = vsel %vm148_vm4, %v160_v28, %v154_v21  ;;  %v162_v33 = vsel %vm148_vm4, %v156_v29, %v158_v20  ;;  %v195_v20 = vld [vmem:[%s6359_s3 + $0x10] sm:$0xff] }
  0x7a   :  { %4533 = vmatprep.subr.msk.mxu0 %vm5363_vm5, %v163_v30  ;;  %4539 = vmatprep.subr.msk.mxu1 %vm5369_vm6, %v161_v31  ;;  %v196_v30 = vld [vmem:[%s6359_s3 + $0x18] sm:$0xff] }
  0x7b   :  { %4534 = vmatpush1.msk.msra.mxu0 %vm173_vm7, %v164_v32  ;;  %4540 = vmatpush1.msk.msra.mxu1 %vm175_vm8, %v162_v33  ;;  %v4557_v33 = vld [vmem:[%s6359_s3 + $0x20] sm:$0xff] }
  0x7c   :  { %4535 = vmatmul.mubr.msk.f32.vlgmr.msra.gmra.mrb[0].mxu0 %vm6365_vm9, %v197_v34  ;;  %4541 = vmatmul.mubr.msk.f32.vlgmr.msra.gmra.mrb[0].mxu1 %vm6365_vm9, %v197_v34  ;;  %v141_v35 = vpop.permute.xlu0 %140  ;;  %v143_v36 = vpop.permute.xlu1 %142  ;;  %v4761_v34 = vld [vmem:[%s6358_s4 + $0xf0] sm:$0xff] }
  0x7d   :  { %v151_v37 = vsel %vm148_vm4, %v141_v35, %v143_v36  ;;  %284 = vmatprep.mubr.f32.mxu0 %v5173_v2  ;;  %373 = vmatprep.mubr.f32.mxu1 %v5173_v2 }
  0x7e   :  { %v186_v39 = vsel %vm5363_vm5, %v151_v37, 0.0  ;;  %3905 = vrot.lane.b32.xlu0 %v5231_v1, %s5181_s18  ;;  %3907 = vrot.lane.b32.xlu1 %v5245_v4, %s5181_s18 }
  0x7f   :  { %4545 = vmatprep.subr.msk.mxu0 %vm6364_vm10, %v186_v39 }
  0x80   :  { %4536 = vmatmul.mubr.msk.f32.gmra.mrb[2].mxu0 %vm6365_vm9, %v198_v38  ;;  %4542 = vmatmul.mubr.msk.f32.gmra.mrb[2].mxu1 %vm6365_vm9, %v198_v38  ;;  %v145_v40 = vpop.permute.xlu0 %144  ;;  %v147_v41 = vpop.permute.xlu1 %146 }
  0x81   :  { %v150_v42 = vsel %vm148_vm4, %v143_v36, %v145_v40  ;;  %v149_v43 = vsel %vm148_vm4, %v145_v40, %v147_v41  ;;  %v152_v44 = vsel %vm148_vm4, %v147_v41, %v141_v35  ;;  %290 = vmatprep.mubr.f32.mxu0 %v5173_v2  ;;  %379 = vmatprep.mubr.f32.mxu1 %v5173_v2  ;;  %v4558_v40 = vld [vmem:[%s6359_s3 + $0x28] sm:$0xff]  ;;  %v4559_v41 = vld [vmem:[%s6359_s3 + $0x30] sm:$0xff]  ;;  %vm5570_vm4 = vcmp.lt.s32.totalorder %v62_v16, 15  ;;  %v4573_v16 = vld [vmem:[%s6358_s4 + $0x20] sm:$0xff] }
  0x82   :  { %v187_v46 = vsel %vm175_vm8, %v150_v42, 0.0  ;;  %v185_v47 = vsel %vm173_vm7, %v152_v44, 0.0  ;;  %v188_v48 = vsel %vm5369_vm6, %v149_v43, 0.0  ;;  %3909 = vrot.lane.b32.xlu0 %v5226_v0, %s5181_s18  ;;  %3911 = vrot.lane.b32.xlu1 %v5240_v3, %s5181_s18  ;;  %vm5581_vm7 = vcmp.lt.s32.totalorder %v48_v14, 15  ;;  %vm1102_vm8 = vmand %vm5570_vm4, %vm5352_vm3  ;;  %v4762_v36 = vld [vmem:[%s6358_s4 + $0xf8] sm:$0xff] }
  0x83   :  { %4546 = vmatpush1.msk.msra.mxu0 %vm6364_vm10, %v185_v47  ;;  %4551 = vmatprep.subr.msk.mxu1 %vm6364_vm10, %v188_v48  ;;  %v4776_v44 = vld [vmem:[%s6359_s3 + $0x118] sm:$0xff] }
  0x84   :  { %4537 = vmatmul.mubr.msk.f32.gmra.mrb[4].mxu0 %vm6365_vm9, %v199_v45  ;;  %4543 = vmatmul.mubr.msk.f32.gmra.mrb[4].mxu1 %vm6365_vm9, %v199_v45  ;;  %v597_v49 = vpop.permute.xlu0 %596  ;;  %v599_v50 = vpop.permute.xlu1 %598  ;;  %v4560_v45 = vld [vmem:[%s6359_s3 + $0x38] sm:$0xff] }
  0x85   :  { %4552 = vmatpush1.msk.msra.mxu1 %vm6364_vm10, %v187_v46  ;;  %296 = vmatprep.mubr.f32.mxu0 %v5173_v2  ;;  %v607_v52 = vsel %vm604_vm11, %v597_v49, %v599_v50  ;;  %v4789_v46 = vld [vmem:[%s6358_s4 + $0x100] sm:$0xff] }
  0x86   :  { %385 = vmatprep.mubr.f32.mxu1 %v5173_v2  ;;  %4561 = vmatprep.subr.msk.mxu0 %vm6364_vm10, %v607_v52 }
  0x88   :  { %4538 = vmatmul.mubr.msk.f32.gmra.mrb[6].mxu0 %vm6365_vm9, %v200_v51  ;;  %4544 = vmatmul.mubr.msk.f32.gmra.mrb[6].mxu1 %vm6365_vm9, %v200_v51  ;;  %v601_v53 = vpop.permute.xlu0 %600  ;;  %v603_v54 = vpop.permute.xlu1 %602 }
  0x89   :  { %482 = vmatprep.mubr.f32.mxu0 %v5173_v2  ;;  %571 = vmatprep.mubr.f32.mxu1 %v5173_v2  ;;  %v606_v56 = vsel %vm604_vm11, %v599_v50, %v601_v53  ;;  %v605_v57 = vsel %vm604_vm11, %v601_v53, %v603_v54  ;;  %v608_v58 = vsel %vm604_vm11, %v603_v54, %v597_v49  ;;  %v4574_v53 = vld [vmem:[%s6358_s4 + $0x28] sm:$0xff] }
  0x8a   :  { %4567 = vmatprep.subr.msk.mxu1 %vm6364_vm10, %v605_v57  ;;  %v631_v59 = vsel %vm5352_vm3, %v606_v56, 0.0  ;;  %v629_v60 = vsel %vm5342_vm1, %v608_v58, 0.0  ;;  %v4575_v56 = vld [vmem:[%s6358_s4 + $0x30] sm:$0xff]  ;;  %v4576_v57 = vld [vmem:[%s6358_s4 + $0x38] sm:$0xff] }
  0x8c   :  { %4547 = vmatmul.mubr.msk.f32.vlgmr.msra.gmra.mrb[0].mxu0 %vm6366_vm12, %v193_v55  ;;  %4553 = vmatmul.mubr.msk.f32.vlgmr.msra.gmra.mrb[0].mxu1 %vm6366_vm12, %v193_v55  ;;  %v610_v61 = vpop.permute.xlu0 %609  ;;  %v612_v62 = vpop.permute.xlu1 %611 }
  0x8d   :  { %488 = vmatprep.mubr.f32.mxu0 %v5173_v2  ;;  %577 = vmatprep.mubr.f32.mxu1 %v5173_v2  ;;  %v619_v9 = vsel %vm604_vm11, %v610_v61, %v612_v62 }
  0x8e   :  { %4562 = vmatpush1.msk.msra.mxu0 %vm6364_vm10, %v629_v60  ;;  %4568 = vmatpush1.msk.msra.mxu1 %vm6364_vm10, %v631_v59  ;;  %v4587_v60 = vld [vmem:[%s6359_s3 + $0x40] sm:$0xff] }
  0x8f   :  { %877 = vmatprep.subr.mxu0 %v619_v9 }
  0x90   :  { %4548 = vmatmul.mubr.msk.f32.gmra.mrb[2].mxu0 %vm6366_vm12, %v194_v63  ;;  %4554 = vmatmul.mubr.msk.f32.gmra.mrb[2].mxu1 %vm6366_vm12, %v194_v63  ;;  %v614_v15 = vpop.permute.xlu0 %613  ;;  %v616_v17 = vpop.permute.xlu1 %615 }
  0x91   :  { %494 = vmatprep.mubr.f32.mxu0 %v5173_v2  ;;  %583 = vmatprep.mubr.f32.mxu1 %v5173_v2  ;;  %v617_v21 = vsel %vm604_vm11, %v614_v15, %v616_v17  ;;  %v618_v38 = vsel %vm604_vm11, %v612_v62, %v614_v15  ;;  %v620_v18 = vsel %vm604_vm11, %v616_v17, %v610_v61  ;;  %vm1100_vm11 = vmand %vm5581_vm7, %vm5342_vm1 }
  0x92   :  { %966 = vmatprep.subr.mxu1 %v617_v21 }
  0x94   :  { %4549 = vmatmul.mubr.msk.f32.gmra.mrb[4].mxu0 %vm6366_vm12, %v195_v20  ;;  %4555 = vmatmul.mubr.msk.f32.gmra.mrb[4].mxu1 %vm6366_vm12, %v195_v20  ;;  %v1072_v28 = vpop.permute.xlu0 %1071  ;;  %v1074_v29 = vpop.permute.xlu1 %1073  ;;  %v4588_v20 = vld [vmem:[%s6359_s3 + $0x48] sm:$0xff] }
  0x95   :  { %500 = vmatprep.mubr.f32.mxu0 %v5173_v2  ;;  %589 = vmatprep.mubr.f32.mxu1 %v5173_v2  ;;  %v1082_v35 = vsel %vm1079_vm13, %v1072_v28, %v1074_v29 }
  0x96   :  { %v1113_v39 = vsel %vm5524_vm14, %v1082_v35, 0.0 }
  0x98   :  { %4550 = vmatmul.mubr.msk.f32.gmra.mrb[6].mxu0 %vm6366_vm12, %v196_v30  ;;  %4556 = vmatmul.mubr.msk.f32.gmra.mrb[6].mxu1 %vm6366_vm12, %v196_v30  ;;  %v1076_v31 = vpop.permute.xlu0 %1075  ;;  %v1078_v32 = vpop.permute.xlu1 %1077 }
  0x99   :  { %730 = vmatprep.mubr.f32.mxu0 %v5173_v2  ;;  %819 = vmatprep.mubr.f32.mxu1 %v5173_v2  ;;  %v1080_v37 = vsel %vm1079_vm13, %v1076_v31, %v1078_v32  ;;  %v1081_v11 = vsel %vm1079_vm13, %v1074_v29, %v1076_v31  ;;  %v1083_v14 = vsel %vm1079_vm13, %v1078_v32, %v1072_v28  ;;  %v4590_v28 = vld [vmem:[%s6359_s3 + $0x58] sm:$0xff]  ;;  %v4603_v31 = vld [vmem:[%s6358_s4 + $0x40] sm:$0xff] }
  0x9a   :  { %v1115_v19 = vsel %vm5532_vm15, %v1080_v37, 0.0  ;;  %v1114_v49 = vsel %vm1102_vm8, %v1081_v11, 0.0  ;;  %v1112_v50 = vsel %vm1100_vm11, %v1083_v14, 0.0  ;;  %v4621_v11 = vld [vmem:[%s6359_s3 + $0x70] sm:$0xff]  ;;  %v4636_v14 = vld [vmem:[%s6358_s4 + $0x68] sm:$0xff] }
  0x9c   :  { %4563 = vmatmul.mubr.msk.f32.vlgmr.msra.gmra.mrb[0].mxu0 %vm6366_vm12, %v4557_v33  ;;  %4569 = vmatmul.mubr.msk.f32.vlgmr.msra.gmra.mrb[0].mxu1 %vm6366_vm12, %v4557_v33  ;;  %v1085_v42 = vpop.permute.xlu0 %1084  ;;  %v1087_v43 = vpop.permute.xlu1 %1086 }
  0x9d   :  { %736 = vmatprep.mubr.f32.mxu0 %v5173_v2  ;;  %825 = vmatprep.mubr.f32.mxu1 %v5173_v2  ;;  %v1094_v51 = vsel %vm1079_vm13, %v1085_v42, %v1087_v43 }
  0x9e   :  { %4577 = vmatpush1.msk.msra.mxu0 %vm5342_vm1, %v620_v18  ;;  %4582 = vmatpush1.msk.msra.mxu1 %vm5352_vm3, %v618_v38  ;;  %vm6391_vm1 = vcmask 64512  }
  0x9f   :  { %4591 = vmatprep.subr.msk.mxu0 %vm6364_vm10, %v1113_v39  ;;  %4597 = vmatprep.subr.msk.mxu1 %vm6364_vm10, %v1115_v19  ;;  %vm6392_vm3 = vmmov %vm6391_vm1  ;;  %v4604_v39 = vld [vmem:[%s6358_s4 + $0x48] sm:$0xff]  ;;  %v4605_v19 = vld [vmem:[%s6358_s4 + $0x50] sm:$0xff] }
  0xa0   :  { %4564 = vmatmul.mubr.msk.f32.gmra.mrb[2].mxu0 %vm6366_vm12, %v4558_v40  ;;  %4570 = vmatmul.mubr.msk.f32.gmra.mrb[2].mxu1 %vm6366_vm12, %v4558_v40  ;;  %v1089_v47 = vpop.permute.xlu0 %1088  ;;  %v1091_v48 = vpop.permute.xlu1 %1090  ;;  %v4606_v40 = vld [vmem:[%s6358_s4 + $0x58] sm:$0xff] }
  0xa1   :  { %742 = vmatprep.mubr.f32.mxu0 %v5173_v2  ;;  %831 = vmatprep.mubr.f32.mxu1 %v5173_v2  ;;  %v1092_v52 = vsel %vm1079_vm13, %v1089_v47, %v1091_v48  ;;  %v1093_v63 = vsel %vm1079_vm13, %v1087_v43, %v1089_v47  ;;  %v1095_v9 = vsel %vm1079_vm13, %v1091_v48, %v1085_v42  ;;  %vm6389_vm13 = vcmask 1043456   ;;  %v4651_v48 = vld [vmem:[%s6359_s3 + $0x80] sm:$0xff] }
  0xa4   :  { %4565 = vmatmul.mubr.msk.f32.gmra.mrb[4].mxu0 %vm6366_vm12, %v4559_v41  ;;  %4571 = vmatmul.mubr.msk.f32.gmra.mrb[4].mxu1 %vm6366_vm12, %v4559_v41  ;;  %v1555_v54 = vpop.permute.xlu0 %1554  ;;  %v1557_v55 = vpop.permute.xlu1 %1556  ;;  %v4619_v41 = vld [vmem:[%s6359_s3 + $0x60] sm:$0xff] }
  0xa5   :  { %748 = vmatprep.mubr.f32.mxu0 %v5173_v2  ;;  %837 = vmatprep.mubr.f32.mxu1 %v5173_v2 }
  0xa8   :  { %4566 = vmatmul.mubr.msk.f32.gmra.mrb[6].mxu0 %vm6366_vm12, %v4560_v45  ;;  %4572 = vmatmul.mubr.msk.f32.gmra.mrb[6].mxu1 %vm6366_vm12, %v4560_v45  ;;  %v1559_v58 = vpop.permute.xlu0 %1558  ;;  %v1561_v59 = vpop.permute.xlu1 %1560  ;;  %v4620_v45 = vld [vmem:[%s6359_s3 + $0x68] sm:$0xff] }
  0xa9   :  { %941 = vmatprep.mubr.f32.mxu0 %v5173_v2  ;;  %1030 = vmatprep.mubr.f32.mxu1 %v5173_v2 }
  0xac   :  { %4578 = vmatmul.mubr.msk.f32.vlgmr.msra.gmra.mrb[0].mxu0 %vm6365_vm9, %v4573_v16  ;;  %4583 = vmatmul.mubr.msk.f32.vlgmr.msra.gmra.mrb[0].mxu1 %vm6365_vm9, %v4573_v16  ;;  %v1568_v21 = vpop.permute.xlu0 %1567  ;;  %v1570_v25 = vpop.permute.xlu1 %1569 }
  0xad   :  { %947 = vmatprep.mubr.f32.mxu0 %v5173_v2  ;;  %1036 = vmatprep.mubr.f32.mxu1 %v5173_v2 }
  0xae   :  { %4592 = vmatpush1.msk.msra.mxu0 %vm6364_vm10, %v1112_v50  ;;  %4598 = vmatpush1.msk.msra.mxu1 %vm6364_vm10, %v1114_v49  ;;  %vm1562_vm10 = vcmp.lt.s32.totalorder %v5315_v10, 1 }
  0xaf   :  { %4607 = vmatprep.subr.msk.mxu0 %vm5524_vm14, %v1094_v51  ;;  %4613 = vmatprep.subr.msk.mxu1 %vm5532_vm15, %v1092_v52  ;;  %v1565_v61 = vsel %vm1562_vm10, %v1555_v54, %v1557_v55  ;;  %v1563_v62 = vsel %vm1562_vm10, %v1559_v58, %v1561_v59  ;;  %v1564_v29 = vsel %vm1562_vm10, %v1557_v55, %v1559_v58  ;;  %v4667_v58 = vld [vmem:[%s6358_s4 + $0x80] sm:$0xff] }
  0xb0   :  { %4579 = vmatmul.mubr.msk.f32.gmra.mrb[2].mxu0 %vm6365_vm9, %v4574_v53  ;;  %4584 = vmatmul.mubr.msk.f32.gmra.mrb[2].mxu1 %vm6365_vm9, %v4574_v53  ;;  %v1588_v15 = vsel %vm5363_vm5, %v1565_v61, 0.0  ;;  %v1590_v17 = vsel %vm5369_vm6, %v1563_v62, 0.0  ;;  %v1566_v30 = vsel %vm1562_vm10, %v1561_v59, %v1555_v54  ;;  %v1572_v32 = vpop.permute.xlu0 %1571  ;;  %v1574_v33 = vpop.permute.xlu1 %1573  ;;  %v1589_v35 = vsel %vm5348_vm2, %v1564_v29, 0.0  ;;  %v4652_v53 = vld [vmem:[%s6359_s3 + $0x88] sm:$0xff]  ;;  %v4653_v54 = vld [vmem:[%s6359_s3 + $0x90] sm:$0xff]  ;;  %v4773_v29 = vld [vmem:[%s6359_s3 + $0x100] sm:$0xff] }
  0xb1   :  { %953 = vmatprep.mubr.f32.mxu0 %v5173_v2  ;;  %1042 = vmatprep.mubr.f32.mxu1 %v5173_v2  ;;  %v1587_v37 = vsel %vm5338_vm0, %v1566_v30, 0.0  ;;  %v1577_v38 = vsel %vm1562_vm10, %v1568_v21, %v1570_v25  ;;  %v1575_v18 = vsel %vm1562_vm10, %v1572_v32, %v1574_v33  ;;  %v1576_v42 = vsel %vm1562_vm10, %v1570_v25, %v1572_v32 }
  0xb2   :  { %v1578_v43 = vsel %vm1562_vm10, %v1574_v33, %v1568_v21  ;;  %vm6399_vm10 = vcmask 1043456   ;;  %v103_v21 = vand.u32 255, %v5325_v12  ;;  %v117_v25 = vand.u32 255, %v5328_v13 }
  0xb4   :  { %4580 = vmatmul.mubr.msk.f32.gmra.mrb[4].mxu0 %vm6365_vm9, %v4575_v56  ;;  %4585 = vmatmul.mubr.msk.f32.gmra.mrb[4].mxu1 %vm6365_vm9, %v4575_v56  ;;  %v2460_v16 = vpop.permute.xlu0 %2459  ;;  %v2462_v47 = vpop.permute.xlu1 %2461 }
  0xb5   :  { %959 = vmatprep.mubr.f32.mxu0 %v5173_v2  ;;  %1048 = vmatprep.mubr.f32.mxu1 %v5173_v2 }
  0xb8   :  { %4581 = vmatmul.mubr.msk.f32.gmra.mrb[6].mxu0 %vm6365_vm9, %v4576_v57  ;;  %4586 = vmatmul.mubr.msk.f32.gmra.mrb[6].mxu1 %vm6365_vm9, %v4576_v57  ;;  %vm6390_vm9 = vmmov %vm6389_vm13 }
  0xb9   :  { %1213 = vmatprep.mubr.f32.mxu0 %v5173_v2  ;;  %1302 = vmatprep.mubr.f32.mxu1 %v5173_v2 }
  0xbc   :  { %4593 = vmatmul.mubr.msk.f32.vlgmr.msra.gmra.mrb[0].mxu0 %vm6366_vm12, %v4587_v60  ;;  %4599 = vmatmul.mubr.msk.f32.vlgmr.msra.gmra.mrb[0].mxu1 %vm6366_vm12, %v4587_v60 }
  0xbd   :  { %1219 = vmatprep.mubr.f32.mxu0 %v5173_v2  ;;  %1308 = vmatprep.mubr.f32.mxu1 %v5173_v2 }
  0xbe   :  { %4608 = vmatpush1.msk.msra.mxu0 %vm1100_vm11, %v1095_v9  ;;  %4614 = vmatpush1.msk.msra.mxu1 %vm1102_vm8, %v1093_v63  ;;  %vm6393_vm8 = vmmov %vm6390_vm9 }
  0xbf   :  { %4623 = vmatprep.subr.msk.mxu0 %vm6389_vm13, %v1588_v15  ;;  %4629 = vmatprep.subr.msk.mxu1 %vm6390_vm9, %v1590_v17  ;;  %vm6394_vm11 = vmmov %vm6391_vm1  ;;  %v4668_v15 = vld [vmem:[%s6358_s4 + $0x88] sm:$0xff] }
  0xc0   :  { %4594 = vmatmul.mubr.msk.f32.gmra.mrb[2].mxu0 %vm6366_vm12, %v4588_v20  ;;  %4600 = vmatmul.mubr.msk.f32.gmra.mrb[2].mxu1 %vm6366_vm12, %v4588_v20  ;;  %vm6395_vm13 = vmmov %vm6391_vm1 }
  0xc1   :  { %1225 = vmatprep.mubr.f32.mxu0 %v5173_v2  ;;  %1314 = vmatprep.mubr.f32.mxu1 %v5173_v2 }
  0xc4   :  { %4595 = vmatmul.mubr.msk.f32.gmra.mrb[4].mxu0 %vm6366_vm12, %v4589_v23  ;;  %4601 = vmatmul.mubr.msk.f32.gmra.mrb[4].mxu1 %vm6366_vm12, %v4589_v23  ;;  %v4669_v23 = vld [vmem:[%s6358_s4 + $0x90] sm:$0xff] }
  0xc5   :  { %1231 = vmatprep.mubr.f32.mxu0 %v5173_v2  ;;  %1320 = vmatprep.mubr.f32.mxu1 %v5173_v2 }
  0xc8   :  { %4596 = vmatmul.mubr.msk.f32.gmra.mrb[6].mxu0 %vm6366_vm12, %v4590_v28  ;;  %4602 = vmatmul.mubr.msk.f32.gmra.mrb[6].mxu1 %vm6366_vm12, %v4590_v28  ;;  %v4670_v28 = vld [vmem:[%s6358_s4 + $0x98] sm:$0xff] }
  0xc9   :  { %1424 = vmatprep.mubr.f32.mxu0 %v5173_v2  ;;  %1513 = vmatprep.mubr.f32.mxu1 %v5173_v2 }
  0xcc   :  { %4609 = vmatmul.mubr.msk.f32.vlgmr.msra.gmra.mrb[0].mxu0 %vm6391_vm1, %v4603_v31  ;;  %4615 = vmatmul.mubr.msk.f32.vlgmr.msra.gmra.mrb[0].mxu1 %vm6392_vm3, %v4603_v31  ;;  %vm6396_vm3 = vmmov %vm6391_vm1  ;;  %v4679_v31 = vld [vmem:[%s6359_s3 + $0xa0] sm:$0xff] }
  0xcd   :  { %1430 = vmatprep.mubr.f32.mxu0 %v5173_v2  ;;  %1519 = vmatprep.mubr.f32.mxu1 %v5173_v2 }
  0xce   :  { %4624 = vmatpush1.msk.msra.mxu0 %vm6390_vm9, %v1587_v37  ;;  %4630 = vmatpush1.msk.msra.mxu1 %vm6393_vm8, %v1589_v35  ;;  %vm6397_vm9 = vmmov %vm6391_vm1  ;;  %v4371_v35 = vld [vmem:[%s6360_s5] sm:$0xff]  ;;  %v4372_v37 = vld [vmem:[%s6360_s5 + $0x8] sm:$0xff] }
  0xcf   :  { %4639 = vmatprep.subr.msk.mxu0 %vm5363_vm5, %v1577_v38  ;;  %4645 = vmatprep.subr.msk.mxu1 %vm5369_vm6, %v1575_v18  ;;  %vm6398_vm8 = vmmov %vm6391_vm1  ;;  %v5182_v38 = vmov 0  }
  0xd0   :  { %4610 = vmatmul.mubr.msk.f32.gmra.mrb[2].mxu0 %vm6394_vm11, %v4604_v39  ;;  %4616 = vmatmul.mubr.msk.f32.gmra.mrb[2].mxu1 %vm6395_vm13, %v4604_v39  ;;  %vm6400_vm11 = vmmov %vm6399_vm10 }
  0xd1   :  { %1436 = vmatprep.mubr.f32.mxu0 %v5173_v2  ;;  %1525 = vmatprep.mubr.f32.mxu1 %v5173_v2  ;;  %vm6401_vm13 = vmmov %vm6391_vm1 }
  0xd2   :  { %5105 = vset.pattern.permute.xlu0 %v5182_v38  ;;  %5106 = vset.pattern.permute.xlu1 %v5182_v38 }
  0xd3   :  { %4377 = vperm.xlu0 %5105, %v4371_v35   ;;  %4382 = vperm.xlu1 %5106, %v4372_v37   ;;  %v4743_v35 = vld [vmem:[%s6359_s3 + $0xe0] sm:$0xff] }
  0xd4   :  { %4611 = vmatmul.mubr.msk.f32.gmra.mrb[4].mxu0 %vm6391_vm1, %v4605_v19  ;;  %4617 = vmatmul.mubr.msk.f32.gmra.mrb[4].mxu1 %vm6396_vm3, %v4605_v19  ;;  %vm6402_vm3 = vmmov %vm6399_vm10 }
  0xd5   :  { %1442 = vmatprep.mubr.f32.mxu0 %v5173_v2  ;;  %1531 = vmatprep.mubr.f32.mxu1 %v5173_v2 }
  0xd8   :  { %4612 = vmatmul.mubr.msk.f32.gmra.mrb[6].mxu0 %vm6397_vm9, %v4606_v40  ;;  %4618 = vmatmul.mubr.msk.f32.gmra.mrb[6].mxu1 %vm6398_vm8, %v4606_v40  ;;  %vm6403_vm9 = vmmov %vm6402_vm3 }
  0xd9   :  { %1688 = vmatprep.mubr.f32.mxu0 %v5173_v2  ;;  %1777 = vmatprep.mubr.f32.mxu1 %v5173_v2  ;;  %vm6404_vm8 = vmmov %vm6391_vm1 }
  0xdc   :  { %4625 = vmatmul.mubr.msk.f32.vlgmr.msra.gmra.mrb[0].mxu0 %vm6366_vm12, %v4619_v41  ;;  %4631 = vmatmul.mubr.msk.f32.vlgmr.msra.gmra.mrb[0].mxu1 %vm6366_vm12, %v4619_v41  ;;  %v4680_v41 = vld [vmem:[%s6359_s3 + $0xa8] sm:$0xff] }
  0xdd   :  { %1694 = vmatprep.mubr.f32.mxu0 %v5173_v2  ;;  %1783 = vmatprep.mubr.f32.mxu1 %v5173_v2 }
  0xde   :  { %4640 = vmatpush1.msk.msra.mxu0 %vm5338_vm0, %v1578_v43  ;;  %4646 = vmatpush1.msk.msra.mxu1 %vm5348_vm2, %v1576_v42  ;;  %v4373_v42 = vld [vmem:[%s6360_s5 + $0x10] sm:$0xff]  ;;  %v4374_v43 = vld [vmem:[%s6360_s5 + $0x18] sm:$0xff] }
  0xdf   :  { %4655 = vmatprep.subr.msk.mxu0 %vm6399_vm10, %v5256_v6  ;;  %4661 = vmatprep.subr.msk.mxu1 %vm6400_vm11, %v5267_v8  ;;  %v4622_v6 = vld [vmem:[%s6359_s3 + $0x78] sm:$0xff]  ;;  %v4635_v8 = vld [vmem:[%s6358_s4 + $0x60] sm:$0xff]  ;;  %vm6405_vm10 = vmmov %vm6391_vm1 }
  0xe0   :  { %4626 = vmatmul.mubr.msk.f32.gmra.mrb[2].mxu0 %vm6366_vm12, %v4620_v45  ;;  %4632 = vmatmul.mubr.msk.f32.gmra.mrb[2].mxu1 %vm6366_vm12, %v4620_v45  ;;  %vm6406_vm11 = vmmov %vm6391_vm1  ;;  %v4681_v45 = vld [vmem:[%s6359_s3 + $0xb0] sm:$0xff] }
  0xe1   :  { %1700 = vmatprep.mubr.f32.mxu0 %v5173_v2  ;;  %1789 = vmatprep.mubr.f32.mxu1 %v5173_v2 }
  0xe2   :  { %4387 = vperm.xlu1 %5106, %v4373_v42   ;;  %4392 = vperm.xlu0 %5105, %v4374_v43   ;;  %v4745_v42 = vld [vmem:[%s6359_s3 + $0xf0] sm:$0xff] }
  0xe4   :  { %4627 = vmatmul.mubr.msk.f32.gmra.mrb[4].mxu0 %vm6366_vm12, %v4621_v11  ;;  %4633 = vmatmul.mubr.msk.f32.gmra.mrb[4].mxu1 %vm6366_vm12, %v4621_v11 }
  0xe5   :  { %1706 = vmatprep.mubr.f32.mxu0 %v5173_v2  ;;  %1795 = vmatprep.mubr.f32.mxu1 %v5173_v2 }
  0xe8   :  { %4628 = vmatmul.mubr.msk.f32.gmra.mrb[6].mxu0 %vm6366_vm12, %v4622_v6  ;;  %4634 = vmatmul.mubr.msk.f32.gmra.mrb[6].mxu1 %vm6366_vm12, %v4622_v6 }
  0xe9   :  { %1899 = vmatprep.mubr.f32.mxu0 %v5173_v2  ;;  %1988 = vmatprep.mubr.f32.mxu1 %v5173_v2 }
  0xec   :  { %4641 = vmatmul.mubr.msk.f32.vlgmr.msra.gmra.mrb[0].mxu0 %vm6401_vm13, %v4635_v8  ;;  %4647 = vmatmul.mubr.msk.f32.vlgmr.msra.gmra.mrb[0].mxu1 %vm6391_vm1, %v4635_v8  ;;  %vm6407_vm13 = vmmov %vm6391_vm1  ;;  %vm2467_vm1 = vcmp.lt.s32.totalorder %v5315_v10, 127  ;;  %v4682_v8 = vld [vmem:[%s6359_s3 + $0xb8] sm:$0xff] }
  0xed   :  { %1905 = vmatprep.mubr.f32.mxu0 %v5173_v2  ;;  %1994 = vmatprep.mubr.f32.mxu1 %v5173_v2  ;;  %v2470_v56 = vsel %vm2467_vm1, %v2460_v16, %v2462_v47 }
  0xee   :  { %4656 = vmatpush1.msk.msra.mxu0 %vm6402_vm3, %v5250_v5  ;;  %4662 = vmatpush1.msk.msra.mxu1 %vm6403_vm9, %v5261_v7  ;;  %v4637_v5 = vld [vmem:[%s6358_s4 + $0x70] sm:$0xff]  ;;  %v2466_v7 = vpop.permute.xlu1 %2465  ;;  %vm6408_vm3 = vmmov %vm6404_vm8  ;;  %v2492_v61 = vsel %vm5581_vm7, %v2470_v56, 0.0 }
  0xef   :  { %2265 = vmatprep.subr.mxu0 %v5245_v4  ;;  %2354 = vmatprep.subr.mxu1 %v5240_v3  ;;  %v4638_v3 = vld [vmem:[%s6358_s4 + $0x78] sm:$0xff]  ;;  %v2464_v4 = vpop.permute.xlu0 %2463  ;;  %vm6409_vm9 = vmmov %vm6408_vm3  ;;  %v2471_v50 = vsel %vm2467_vm1, %v2466_v7, %v2460_v16 }
  0xf0   :  { %4642 = vmatmul.mubr.msk.f32.gmra.mrb[2].mxu0 %vm6404_vm8, %v4636_v14  ;;  %4648 = vmatmul.mubr.msk.f32.gmra.mrb[2].mxu1 %vm6405_vm10, %v4636_v14  ;;  %v2469_v49 = vsel %vm2467_vm1, %v2462_v47, %v2464_v4  ;;  %v2495_v52 = vsel %vm5532_vm15, %v2471_v50, 0.0  ;;  %vm6410_vm8 = vcmask 1043456   ;;  %v2468_v57 = vsel %vm2467_vm1, %v2464_v4, %v2466_v7  ;;  %v4695_v47 = vld [vmem:[%s6358_s4 + $0xa0] sm:$0xff]  ;;  %v4696_v50 = vld [vmem:[%s6358_s4 + $0xa8] sm:$0xff] }
  0xf1   :  { %1911 = vmatprep.mubr.f32.mxu0 %v5173_v2  ;;  %2000 = vmatprep.mubr.f32.mxu1 %v5173_v2  ;;  %v2493_v51 = vsel %vm5524_vm14, %v2469_v49, 0.0  ;;  %vm6411_vm10 = vmmov %vm6410_vm8  ;;  %v2494_v62 = vsel %vm5570_vm4, %v2468_v57, 0.0 }
  0xf3   :  { %v5852_v55 = vpop.permute.xlu0 %2472 }
  0xf4   :  { %4643 = vmatmul.mubr.msk.f32.gmra.mrb[4].mxu0 %vm6406_vm11, %v4637_v5  ;;  %4649 = vmatmul.mubr.msk.f32.gmra.mrb[4].mxu1 %vm6407_vm13, %v4637_v5  ;;  %vm6412_vm11 = vmmov %vm6408_vm3 }
  0xf5   :  { %1917 = vmatprep.mubr.f32.mxu0 %v5173_v2  ;;  %2006 = vmatprep.mubr.f32.mxu1 %v5173_v2  ;;  %vm6413_vm13 = vmmov %vm6408_vm3 }
  0xf7   :  { %v2477_v59 = vpop.permute.xlu0 %2476 }
  0xf8   :  { %4644 = vmatmul.mubr.msk.f32.gmra.mrb[6].mxu0 %vm6408_vm3, %v4638_v3  ;;  %4650 = vmatmul.mubr.msk.f32.gmra.mrb[6].mxu1 %vm6409_vm9, %v4638_v3  ;;  %vm6414_vm3 = vmmov %vm6410_vm8 }
  0xf9   :  { %2118 = vmatprep.mubr.f32.mxu0 %v5173_v2  ;;  %2207 = vmatprep.mubr.f32.mxu1 %v5173_v2  ;;  %vm6415_vm9 = vmmov %vm6414_vm3 }
  0xfb   :  { %v5899_v17 = vpop.permute.xlu0 %2934 }
  0xfc   :  { %4657 = vmatmul.mubr.msk.f32.vlgmr.msra.gmra.mrb[0].mxu0 %vm6366_vm12, %v4651_v48  ;;  %4663 = vmatmul.mubr.msk.f32.vlgmr.msra.gmra.mrb[0].mxu1 %vm6366_vm12, %v4651_v48 }
  0xfd   :  { %2124 = vmatprep.mubr.f32.mxu0 %v5173_v2  ;;  %2213 = vmatprep.mubr.f32.mxu1 %v5173_v2 }
  0xfe   :  { %2266 = vmatpush1.msra.mxu0 %v5231_v1  ;;  %2355 = vmatpush1.msra.mxu1 %v5226_v0  ;;  %v5854_v1 = vpop.permute.xlu1 %2474  ;;  %v4654_v0 = vld [vmem:[%s6359_s3 + $0x98] sm:$0xff] }
  0xff   :  { %4683 = vmatprep.subr.msk.mxu0 %vm6410_vm8, %v2493_v51  ;;  %4689 = vmatprep.subr.msk.mxu1 %vm6411_vm10, %v2495_v52  ;;  %v2481_v63 = vsel %vm2467_vm1, %v5854_v1, %v2477_v59  ;;  %vm6416_vm8 = vmmov %vm6412_vm11  ;;  %v2939_v12 = vpop.permute.xlu0 %2938  ;;  %v2482_v18 = vsel %vm2467_vm1, %v5852_v55, %v5854_v1 }
 0x100   :  { %4658 = vmatmul.mubr.msk.f32.gmra.mrb[2].mxu0 %vm6366_vm12, %v4652_v53  ;;  %4664 = vmatmul.mubr.msk.f32.gmra.mrb[2].mxu1 %vm6366_vm12, %v4652_v53  ;;  %vm6417_vm10 = vmmov %vm6416_vm8 }
 0x101   :  { %2130 = vmatprep.mubr.f32.mxu0 %v5173_v2  ;;  %2219 = vmatprep.mubr.f32.mxu1 %v5173_v2 }
 0x102   :  { %v2479_v60 = vpop.permute.xlu1 %2478 }
 0x103   :  { %v2483_v9 = vsel %vm2467_vm1, %v2479_v60, %v5852_v55  ;;  %v2480_v39 = vsel %vm2467_vm1, %v2477_v59, %v2479_v60  ;;  %vm6425_vm1 = vcmask 1043456   ;;  %v2948_v11 = vpop.permute.xlu0 %2947  ;;  %v4711_v55 = vld [vmem:[%s6359_s3 + $0xc0] sm:$0xff]  ;;  %v4712_v60 = vld [vmem:[%s6359_s3 + $0xc8] sm:$0xff] }
 0x104   :  { %4659 = vmatmul.mubr.msk.f32.gmra.mrb[4].mxu0 %vm6366_vm12, %v4653_v54  ;;  %4665 = vmatmul.mubr.msk.f32.gmra.mrb[4].mxu1 %vm6366_vm12, %v4653_v54 }
 0x105   :  { %2136 = vmatprep.mubr.f32.mxu0 %v5173_v2  ;;  %2225 = vmatprep.mubr.f32.mxu1 %v5173_v2 }
 0x106   :  { %v5901_v20 = vpop.permute.xlu1 %2936 }
 0x107   :  { %v2952_v5 = vpop.permute.xlu0 %2951 }
 0x108   :  { %4660 = vmatmul.mubr.msk.f32.gmra.mrb[6].mxu0 %vm6366_vm12, %v4654_v0  ;;  %4666 = vmatmul.mubr.msk.f32.gmra.mrb[6].mxu1 %vm6366_vm12, %v4654_v0 }
 0x109   :  { %2329 = vmatprep.mubr.f32.mxu0 %v5173_v2  ;;  %2418 = vmatprep.mubr.f32.mxu1 %v5173_v2 }
 0x10a   :  { %v2941_v30 = vpop.permute.xlu1 %2940 }
 0x10b   :  { %v3418_v51 = vpop.permute.xlu0 %3417 }
 0x10c   :  { %4671 = vmatmul.mubr.msk.f32.vlgmr.msra.gmra.mrb[0].mxu0 %vm6412_vm11, %v4667_v58  ;;  %4675 = vmatmul.mubr.msk.f32.vlgmr.msra.gmra.mrb[0].mxu1 %vm6413_vm13, %v4667_v58  ;;  %vm6418_vm11 = vmmov %vm6416_vm8 }
 0x10d   :  { %2335 = vmatprep.mubr.f32.mxu0 %v5173_v2  ;;  %2424 = vmatprep.mubr.f32.mxu1 %v5173_v2  ;;  %vm6419_vm13 = vmmov %vm6416_vm8 }
 0x10e   :  { %4684 = vmatpush1.msk.msra.mxu0 %vm6414_vm3, %v2492_v61  ;;  %4690 = vmatpush1.msk.msra.mxu1 %vm6415_vm9, %v2494_v62  ;;  %vm5917_vm3 = vcmp.lt.s32.totalorder %v103_v21, 240  ;;  %vm6368_vm9 = vcmp.lt.s32.totalorder %v5315_v10, 113  ;;  %v2950_v6 = vpop.permute.xlu1 %2949 }
 0x10f   :  { %4699 = vmatprep.subr.msk.mxu0 %vm5524_vm14, %v2481_v63  ;;  %4705 = vmatprep.subr.msk.mxu1 %vm5532_vm15, %v2483_v9  ;;  %v2944_v32 = vsel %vm6368_vm9, %v5901_v20, %v2939_v12  ;;  %v2946_v33 = vsel %vm6368_vm9, %v2941_v30, %v5899_v17  ;;  %v2945_v14 = vsel %vm6368_vm9, %v5899_v17, %v5901_v20  ;;  %v3422_v53 = vpop.permute.xlu0 %3421  ;;  %v4727_v63 = vld [vmem:[%s6358_s4 + $0xc0] sm:$0xff] }
 0x110   :  { %4672 = vmatmul.mubr.msk.f32.gmra.mrb[2].mxu0 %vm6416_vm8, %v4668_v15  ;;  %4676 = vmatmul.mubr.msk.f32.gmra.mrb[2].mxu1 %vm6417_vm10, %v4668_v15  ;;  %vm5922_vm8 = vcmp.lt.s32.totalorder %v117_v25, 240  ;;  %v2943_v16 = vsel %vm6368_vm9, %v2939_v12, %v2941_v30  ;;  %v2975_v4 = vsel %vm5338_vm0, %v2945_v14, 0.0  ;;  %v2956_v48 = vsel %vm6368_vm9, %v2950_v6, %v2952_v5  ;;  %v4728_v25 = vld [vmem:[%s6358_s4 + $0xc8] sm:$0xff]  ;;  %v4729_v30 = vld [vmem:[%s6358_s4 + $0xd0] sm:$0xff]  ;;  %v4759_v14 = vld [vmem:[%s6358_s4 + $0xe0] sm:$0xff] }
 0x111   :  { %2341 = vmatprep.mubr.f32.mxu0 %v5173_v2  ;;  %2430 = vmatprep.mubr.f32.mxu1 %v5173_v2  ;;  %v2977_v7 = vsel %vm5348_vm2, %v2943_v16, 0.0 }
 0x112   :  { %v2954_v3 = vpop.permute.xlu1 %2953 }
 0x113   :  { %v2958_v49 = vsel %vm6368_vm9, %v2954_v3, %v2948_v11  ;;  %v3431_v61 = vpop.permute.xlu0 %3430 }
 0x114   :  { %4673 = vmatmul.mubr.msk.f32.gmra.mrb[4].mxu0 %vm6418_vm11, %v4669_v23  ;;  %4677 = vmatmul.mubr.msk.f32.gmra.mrb[4].mxu1 %vm6419_vm13, %v4669_v23  ;;  %vm6424_vm11 = vmmov %vm6417_vm10 }
 0x115   :  { %2347 = vmatprep.mubr.f32.mxu0 %v5173_v2  ;;  %2436 = vmatprep.mubr.f32.mxu1 %v5173_v2  ;;  %vm2964_vm13 = vmand %vm5363_vm5, %vm5917_vm3 }
 0x116   :  { %v2976_v19 = vsel %vm2964_vm13, %v2944_v32, 0.0  ;;  %v3420_v52 = vpop.permute.xlu1 %3419 }
 0x117   :  { %v3435_v9 = vpop.permute.xlu0 %3434 }
 0x118   :  { %4674 = vmatmul.mubr.msk.f32.gmra.mrb[6].mxu0 %vm6417_vm10, %v4670_v28  ;;  %4678 = vmatmul.mubr.msk.f32.gmra.mrb[6].mxu1 %vm6424_vm11, %v4670_v28  ;;  %vm6367_vm10 = vmand %vm5369_vm6, %vm5922_vm8 }
 0x119   :  { %2593 = vmatprep.mubr.f32.mxu0 %v5173_v2  ;;  %2682 = vmatprep.mubr.f32.mxu1 %v5173_v2  ;;  %v2978_v40 = vsel %vm6367_vm10, %v2946_v33, 0.0  ;;  %vm6426_vm11 = vmmov %vm6425_vm1 }
 0x11a   :  { %v3424_v54 = vpop.permute.xlu1 %3423 }
 0x11b   :  { %v3893_v28 = vpop.permute.xlu0 %3892 }
 0x11c   :  { %4685 = vmatmul.mubr.msk.f32.vlgmr.msra.gmra.mrb[0].mxu0 %vm6366_vm12, %v4679_v31  ;;  %4691 = vmatmul.mubr.msk.f32.vlgmr.msra.gmra.mrb[0].mxu1 %vm6366_vm12, %v4679_v31  ;;  %v4730_v31 = vld [vmem:[%s6358_s4 + $0xd8] sm:$0xff] }
 0x11d   :  { %2599 = vmatprep.mubr.f32.mxu0 %v5173_v2  ;;  %2688 = vmatprep.mubr.f32.mxu1 %v5173_v2 }
 0x11e   :  { %4700 = vmatpush1.msk.msra.mxu0 %vm5581_vm7, %v2482_v18  ;;  %4706 = vmatpush1.msk.msra.mxu1 %vm5570_vm4, %v2480_v39  ;;  %v3433_v62 = vpop.permute.xlu1 %3432 }
 0x11f   :  { %4715 = vmatprep.subr.msk.mxu0 %vm6425_vm1, %v2976_v19  ;;  %4721 = vmatprep.subr.msk.mxu1 %vm6426_vm11, %v2978_v40  ;;  %vm6427_vm1 = vcmask 64512   ;;  %v3897_v32 = vpop.permute.xlu0 %3896 }
 0x120   :  { %4686 = vmatmul.mubr.msk.f32.gmra.mrb[2].mxu0 %vm6366_vm12, %v4680_v41  ;;  %4692 = vmatmul.mubr.msk.f32.gmra.mrb[2].mxu1 %vm6366_vm12, %v4680_v41  ;;  %vm6428_vm11 = vmmov %vm6427_vm1  ;;  %v4744_v41 = vld [vmem:[%s6359_s3 + $0xe8] sm:$0xff] }
 0x121   :  { %2605 = vmatprep.mubr.f32.mxu0 %v5173_v2  ;;  %2694 = vmatprep.mubr.f32.mxu1 %v5173_v2  ;;  %vm6432_vm9 = vmmov %vm6428_vm11 }
 0x122   :  { %vm6433_vm5 = vmmov %vm6432_vm9  ;;  %v3437_v15 = vpop.permute.xlu1 %3436 }
 0x123   :  { %v3906_v43 = vpop.permute.xlu0 %3905 }
 0x124   :  { %4687 = vmatmul.mubr.msk.f32.gmra.mrb[4].mxu0 %vm6366_vm12, %v4681_v45  ;;  %4693 = vmatmul.mubr.msk.f32.gmra.mrb[4].mxu1 %vm6366_vm12, %v4681_v45 }
 0x125   :  { %2611 = vmatprep.mubr.f32.mxu0 %v5173_v2  ;;  %2700 = vmatprep.mubr.f32.mxu1 %v5173_v2 }
 0x126   :  { %v3895_v12 = vpop.permute.xlu1 %3894 }
 0x127   :  { %v3910_v16 = vpop.permute.xlu0 %3909 }
 0x128   :  { %4688 = vmatmul.mubr.msk.f32.gmra.mrb[6].mxu0 %vm6366_vm12, %v4682_v8  ;;  %4694 = vmatmul.mubr.msk.f32.gmra.mrb[6].mxu1 %vm6366_vm12, %v4682_v8  ;;  %vm6429_vm12 = vcmask 1043456  }
 0x129   :  { %2804 = vmatprep.mubr.f32.mxu0 %v5173_v2  ;;  %2893 = vmatprep.mubr.f32.mxu1 %v5173_v2  ;;  %vm6430_vm10 = vmmov %vm6429_vm12 }
 0x12a   :  { %v3899_v33 = vpop.permute.xlu1 %3898 }
 0x12c   :  { %4701 = vmatmul.mubr.msk.f32.vlgmr.msra.gmra.mrb[0].mxu0 %vm6427_vm1, %v4695_v47  ;;  %4707 = vmatmul.mubr.msk.f32.vlgmr.msra.gmra.mrb[0].mxu1 %vm6428_vm11, %v4695_v47  ;;  %vm6431_vm1 = vmand %vm5369_vm6, %vm5922_vm8  ;;  %vm3425_vm6 = vcmp.lt.s32.totalorder %v5315_v10, 112 }
 0x12d   :  { %2810 = vmatprep.mubr.f32.mxu0 %v5173_v2  ;;  %2899 = vmatprep.mubr.f32.mxu1 %v5173_v2  ;;  %v3427_v1 = vsel %vm3425_vm6, %v3420_v52, %v3422_v53  ;;  %v3429_v0 = vsel %vm3425_vm6, %v3424_v54, %v3418_v51  ;;  %v3428_v17 = vsel %vm3425_vm6, %v3418_v51, %v3420_v52  ;;  %v4790_v51 = vld [vmem:[%s6358_s4 + $0x108] sm:$0xff]  ;;  %v4791_v52 = vld [vmem:[%s6358_s4 + $0x110] sm:$0xff] }
 0x12e   :  { %4716 = vmatpush1.msk.msra.mxu0 %vm6429_vm12, %v2975_v4  ;;  %4722 = vmatpush1.msk.msra.mxu1 %vm6430_vm10, %v2977_v7  ;;  %vm6434_vm12 = vmmov %vm6433_vm5  ;;  %vm6437_vm10 = vcmp.lt.s32.totalorder %v5315_v10, 113  ;;  %v3451_v58 = vsel %vm5917_vm3, %v3427_v1, 0.0  ;;  %v3453_v59 = vsel %vm5922_vm8, %v3429_v0, 0.0  ;;  %v3426_v20 = vsel %vm3425_vm6, %v3422_v53, %v3424_v54  ;;  %v3908_v45 = vpop.permute.xlu1 %3907 }
 0x12f   :  { %4731 = vmatprep.subr.msk.mxu0 %vm2964_vm13, %v2956_v48  ;;  %4737 = vmatprep.subr.msk.mxu1 %vm6431_vm1, %v2958_v49  ;;  %vm6436_vm13 = vmmov %vm6433_vm5  ;;  %v2957_v56 = vsel %vm6437_vm10, %v2948_v11, %v2950_v6  ;;  %v3439_v23 = vsel %vm3425_vm6, %v3433_v62, %v3435_v9  ;;  %v3441_v21 = vsel %vm3425_vm6, %v3437_v15, %v3431_v61  ;;  %v4746_v11 = vld [vmem:[%s6359_s3 + $0xf8] sm:$0xff]  ;;  %v4760_v48 = vld [vmem:[%s6358_s4 + $0xe8] sm:$0xff] }
 0x130   :  { %4702 = vmatmul.mubr.msk.f32.gmra.mrb[2].mxu0 %vm6428_vm11, %v4696_v50  ;;  %4708 = vmatmul.mubr.msk.f32.gmra.mrb[2].mxu1 %vm6432_vm9, %v4696_v50  ;;  %vm6435_vm9 = vmmov %vm6433_vm5  ;;  %vm6439_vm11 = vcmask 31744   ;;  %v3440_v18 = vsel %vm3425_vm6, %v3431_v61, %v3433_v62  ;;  %v3438_v39 = vsel %vm3425_vm6, %v3435_v9, %v3437_v15  ;;  %vm6460_vm6 = vcmask 1043456   ;;  %v4774_v50 = vld [vmem:[%s6359_s3 + $0x108] sm:$0xff] }
 0x131   :  { %2816 = vmatprep.mubr.f32.mxu0 %v5173_v2  ;;  %2905 = vmatprep.mubr.f32.mxu1 %v5173_v2  ;;  %vm6438_vm1 = vmmov %vm6437_vm10 }
 0x132   :  { %v2955_v57 = vsel %vm6438_vm1, %v2952_v5, %v2954_v3  ;;  %v3912_v47 = vpop.permute.xlu1 %3911 }
 0x134   :  { %4703 = vmatmul.mubr.msk.f32.gmra.mrb[4].mxu0 %vm6433_vm5, %v4697_v26  ;;  %4709 = vmatmul.mubr.msk.f32.gmra.mrb[4].mxu1 %vm6434_vm12, %v4697_v26  ;;  %vm6440_vm5 = vmmov %vm6439_vm11  ;;  %vm6441_vm12 = vcmask 1043456   ;;  %v4792_v26 = vld [vmem:[%s6358_s4 + $0x118] sm:$0xff] }
 0x135   :  { %2822 = vmatprep.mubr.f32.mxu0 %v5173_v2  ;;  %2911 = vmatprep.mubr.f32.mxu1 %v5173_v2  ;;  %vm6444_vm10 = vmmov %vm6440_vm5 }
 0x138   :  { %4704 = vmatmul.mubr.msk.f32.gmra.mrb[6].mxu0 %vm6435_vm9, %v4698_v27  ;;  %4710 = vmatmul.mubr.msk.f32.gmra.mrb[6].mxu1 %vm6436_vm13, %v4698_v27  ;;  %vm6442_vm9 = vmmov %vm6441_vm12 }
 0x139   :  { %3076 = vmatprep.mubr.f32.mxu0 %v5173_v2  ;;  %3165 = vmatprep.mubr.f32.mxu1 %v5173_v2  ;;  %vm6443_vm13 = vmmov %vm6440_vm5 }
 0x13c   :  { %4717 = vmatmul.mubr.msk.f32.vlgmr.msra.gmra.mrb[0].mxu0 %vm6439_vm11, %v4711_v55  ;;  %4723 = vmatmul.mubr.msk.f32.vlgmr.msra.gmra.mrb[0].mxu1 %vm6440_vm5, %v4711_v55 }
 0x13d   :  { %3082 = vmatprep.mubr.f32.mxu0 %v5173_v2  ;;  %3171 = vmatprep.mubr.f32.mxu1 %v5173_v2 }
 0x13e   :  { %4732 = vmatpush1.msk.msra.mxu0 %vm5338_vm0, %v2957_v56  ;;  %4738 = vmatpush1.msk.msra.mxu1 %vm5348_vm2, %v2955_v57  ;;  %vm6445_vm0 = vmmov %vm6440_vm5  ;;  %vm6449_vm5 = vcmask 64512  }
 0x13f   :  { %4747 = vmatprep.subr.msk.mxu0 %vm6441_vm12, %v3451_v58  ;;  %4753 = vmatprep.subr.msk.mxu1 %vm6442_vm9, %v3453_v59  ;;  %vm6446_vm2 = vmmov %vm6445_vm0 }
 0x140   :  { %4718 = vmatmul.mubr.msk.f32.gmra.mrb[2].mxu0 %vm6443_vm13, %v4712_v60  ;;  %4724 = vmatmul.mubr.msk.f32.gmra.mrb[2].mxu1 %vm6444_vm10, %v4712_v60  ;;  %vm6447_vm1 = vmmov %vm6445_vm0 }
 0x141   :  { %3088 = vmatprep.mubr.f32.mxu0 %v5173_v2  ;;  %3177 = vmatprep.mubr.f32.mxu1 %v5173_v2  ;;  %vm6448_vm11 = vmmov %vm6445_vm0 }
 0x142   :  { %vm6450_vm12 = vmmov %vm6449_vm5 }
 0x143   :  { %vm6451_vm13 = vmmov %vm6442_vm9 }
 0x144   :  { %4719 = vmatmul.mubr.msk.f32.gmra.mrb[4].mxu0 %vm6445_vm0, %v4713_v22  ;;  %4725 = vmatmul.mubr.msk.f32.gmra.mrb[4].mxu1 %vm6446_vm2, %v4713_v22  ;;  %vm6452_vm10 = vmmov %vm6449_vm5 }
 0x145   :  { %3094 = vmatprep.mubr.f32.mxu0 %v5173_v2  ;;  %3183 = vmatprep.mubr.f32.mxu1 %v5173_v2  ;;  %vm6453_vm0 = vmmov %vm6449_vm5 }
 0x146   :  { %vm6454_vm2 = vmmov %vm6453_vm0 }
 0x148   :  { %4720 = vmatmul.mubr.msk.f32.gmra.mrb[6].mxu0 %vm6447_vm1, %v4714_v24  ;;  %4726 = vmatmul.mubr.msk.f32.gmra.mrb[6].mxu1 %vm6448_vm11, %v4714_v24  ;;  %vm6455_vm1 = vmmov %vm6453_vm0  ;;  %vm3900_vm11 = vcmp.lt.s32.totalorder %v5315_v10, 111  ;;  %v4775_v10 = vld [vmem:[%s6359_s3 + $0x110] sm:$0xff] }
 0x149   :  { %3287 = vmatprep.mubr.f32.mxu0 %v5173_v2  ;;  %3376 = vmatprep.mubr.f32.mxu1 %v5173_v2  ;;  %v3902_v37 = vsel %vm3900_vm11, %v3895_v12, %v3897_v32  ;;  %v3904_v38 = vsel %vm3900_vm11, %v3899_v33, %v3893_v28  ;;  %v3903_v6 = vsel %vm3900_vm11, %v3893_v28, %v3895_v12 }
 0x14a   :  { %v3901_v8 = vsel %vm3900_vm11, %v3897_v32, %v3899_v33  ;;  %v3929_v5 = vsel %vm5581_vm7, %v3903_v6, 0.0  ;;  %v3914_v4 = vsel %vm3900_vm11, %v3908_v45, %v3910_v16  ;;  %v3916_v7 = vsel %vm3900_vm11, %v3912_v47, %v3906_v43 }
 0x14b   :  { %v3931_v3 = vsel %vm5570_vm4, %v3901_v8, 0.0  ;;  %v3915_v13 = vsel %vm3900_vm11, %v3906_v43, %v3908_v45  ;;  %v3913_v49 = vsel %vm3900_vm11, %v3910_v16, %v3912_v47 }
 0x14c   :  { %4733 = vmatmul.mubr.msk.f32.vlgmr.msra.gmra.mrb[0].mxu0 %vm6449_vm5, %v4727_v63  ;;  %4739 = vmatmul.mubr.msk.f32.vlgmr.msra.gmra.mrb[0].mxu1 %vm6450_vm12, %v4727_v63  ;;  %vm6456_vm5 = vmmov %vm6453_vm0 }
 0x14d   :  { %4748 = vmatpush1.msk.msra.mxu0 %vm6442_vm9, %v3428_v17  ;;  %3293 = vmatprep.mubr.f32.mxu0 %v5173_v2  ;;  %vm6457_vm12 = vmmov %vm6453_vm0 }
 0x14e   :  { %3382 = vmatprep.mubr.f32.mxu1 %v5173_v2  ;;  %4754 = vmatpush1.msk.msra.mxu1 %vm6451_vm13, %v3426_v20  ;;  %vm3918_vm9 = vmand %vm5524_vm14, %vm5917_vm3 }
 0x14f   :  { %4763 = vmatprep.subr.msk.mxu0 %vm5917_vm3, %v3439_v23  ;;  %4768 = vmatprep.subr.msk.mxu1 %vm5922_vm8, %v3441_v21  ;;  %vm3920_vm13 = vmand %vm5532_vm15, %vm5922_vm8  ;;  %v3930_v19 = vsel %vm3918_vm9, %v3902_v37, 0.0 }
 0x150   :  { %4734 = vmatmul.mubr.msk.f32.gmra.mrb[2].mxu0 %vm6452_vm10, %v4728_v25  ;;  %4740 = vmatmul.mubr.msk.f32.gmra.mrb[2].mxu1 %vm6453_vm0, %v4728_v25  ;;  %vm6458_vm10 = vcmask 31744   ;;  %v3932_v40 = vsel %vm3920_vm13, %v3904_v38, 0.0 }
 0x151   :  { %3299 = vmatprep.mubr.f32.mxu0 %v5173_v2  ;;  %3388 = vmatprep.mubr.f32.mxu1 %v5173_v2  ;;  %vm6459_vm0 = vmmov %vm6458_vm10 }
 0x152   :  { %v4378_v27 = vpop.permute.xlu0 %4377 }
 0x154   :  { %4735 = vmatmul.mubr.msk.f32.gmra.mrb[4].mxu0 %vm6454_vm2, %v4729_v30  ;;  %4741 = vmatmul.mubr.msk.f32.gmra.mrb[4].mxu1 %vm6455_vm1, %v4729_v30  ;;  %vm6461_vm2 = vmmov %vm6460_vm6 }
 0x155   :  { %3305 = vmatprep.mubr.f32.mxu0 %v5173_v2  ;;  %3394 = vmatprep.mubr.f32.mxu1 %v5173_v2  ;;  %vm6462_vm1 = vmmov %vm6459_vm0 }
 0x158   :  { %4736 = vmatmul.mubr.msk.f32.gmra.mrb[6].mxu0 %vm6456_vm5, %v4730_v31  ;;  %4742 = vmatmul.mubr.msk.f32.gmra.mrb[6].mxu1 %vm6457_vm12, %v4730_v31  ;;  %vm6463_vm5 = vmmov %vm6459_vm0 }
 0x159   :  { %3551 = vmatprep.mubr.f32.mxu0 %v5173_v2  ;;  %3640 = vmatprep.mubr.f32.mxu1 %v5173_v2  ;;  %vm6464_vm12 = vmmov %vm6459_vm0 }
 0x15c   :  { %4749 = vmatmul.mubr.msk.f32.vlgmr.msra.gmra.mrb[0].mxu0 %vm6458_vm10, %v4743_v35  ;;  %4755 = vmatmul.mubr.msk.f32.vlgmr.msra.gmra.mrb[0].mxu1 %vm6459_vm0, %v4743_v35  ;;  %vm6465_vm10 = vmmov %vm6459_vm0 }
 0x15d   :  { %3557 = vmatprep.mubr.f32.mxu0 %v5173_v2  ;;  %3646 = vmatprep.mubr.f32.mxu1 %v5173_v2 }
 0x15e   :  { %3699 = vmatpush1.msra.mxu0 %v3440_v18  ;;  %3788 = vmatpush1.msra.mxu1 %v3438_v39 }
 0x15f   :  { %4777 = vmatprep.subr.msk.mxu0 %vm6460_vm6, %v3930_v19  ;;  %4783 = vmatprep.subr.msk.mxu1 %vm6461_vm2, %v3932_v40  ;;  %vm6466_vm6 = vmmov %vm6459_vm0  ;;  %vm6467_vm2 = vcmask 64512  }
 0x160   :  { %4750 = vmatmul.mubr.msk.f32.gmra.mrb[2].mxu0 %vm6462_vm1, %v4744_v41  ;;  %4756 = vmatmul.mubr.msk.f32.gmra.mrb[2].mxu1 %vm6463_vm5, %v4744_v41  ;;  %vm6468_vm1 = vmmov %vm6467_vm2  ;;  %vm6469_vm5 = vcmask 1043456  }
 0x161   :  { %3563 = vmatprep.mubr.f32.mxu0 %v5173_v2  ;;  %3652 = vmatprep.mubr.f32.mxu1 %v5173_v2  ;;  %vm6479_vm11 = vmmov %vm6466_vm6  ;;  %v4393_v38 = vpop.permute.xlu0 %4392 }
 0x164   :  { %4751 = vmatmul.mubr.msk.f32.gmra.mrb[4].mxu0 %vm6464_vm12, %v4745_v42  ;;  %4757 = vmatmul.mubr.msk.f32.gmra.mrb[4].mxu1 %vm6465_vm10, %v4745_v42  ;;  %vm6470_vm12 = vmmov %vm6469_vm5 }
 0x165   :  { %3569 = vmatprep.mubr.f32.mxu0 %v5173_v2  ;;  %3658 = vmatprep.mubr.f32.mxu1 %v5173_v2  ;;  %vm6471_vm10 = vmmov %vm6468_vm1 }
 0x168   :  { %4752 = vmatmul.mubr.msk.f32.gmra.mrb[6].mxu0 %vm6459_vm0, %v4746_v11  ;;  %4758 = vmatmul.mubr.msk.f32.gmra.mrb[6].mxu1 %vm6466_vm6, %v4746_v11  ;;  %vm6472_vm0 = vmmov %vm6468_vm1 }
 0x169   :  { %3762 = vmatprep.mubr.f32.mxu0 %v5173_v2  ;;  %3851 = vmatprep.mubr.f32.mxu1 %v5173_v2  ;;  %vm6473_vm14 = vmmov %vm6472_vm0 }
 0x16a   :  { %vm6474_vm3 = vmmov %vm6472_vm0 }
 0x16b   :  { %vm6475_vm15 = vmmov %vm6472_vm0 }
 0x16c   :  { %4764 = vmatmul.mubr.msk.f32.vlgmr.msra.gmra.mrb[0].mxu0 %vm6467_vm2, %v4759_v14  ;;  %4769 = vmatmul.mubr.msk.f32.vlgmr.msra.gmra.mrb[0].mxu1 %vm6468_vm1, %v4759_v14  ;;  %vm6476_vm8 = vmmov %vm6472_vm0 }
 0x16d   :  { %3768 = vmatprep.mubr.f32.mxu0 %v5173_v2  ;;  %3857 = vmatprep.mubr.f32.mxu1 %v5173_v2  ;;  %vm6480_vm2 = vmmov %vm6466_vm6 }
 0x16e   :  { %4778 = vmatpush1.msk.msra.mxu0 %vm6469_vm5, %v3929_v5  ;;  %4784 = vmatpush1.msk.msra.mxu1 %vm6470_vm12, %v3931_v3  ;;  %vm6481_vm1 = vmmov %vm6480_vm2 }
 0x16f   :  { %4793 = vmatprep.subr.msk.mxu0 %vm3918_vm9, %v3914_v4  ;;  %4799 = vmatprep.subr.msk.mxu1 %vm3920_vm13, %v3916_v7  ;;  %vm6477_vm9 = vmmov %vm6466_vm6 }
 0x170   :  { %4765 = vmatmul.mubr.msk.f32.gmra.mrb[2].mxu0 %vm6471_vm10, %v4760_v48  ;;  %4770 = vmatmul.mubr.msk.f32.gmra.mrb[2].mxu1 %vm6472_vm0, %v4760_v48  ;;  %vm6478_vm13 = vmmov %vm6466_vm6 }
 0x171   :  { %3774 = vmatprep.mubr.f32.mxu0 %v5173_v2  ;;  %3863 = vmatprep.mubr.f32.mxu1 %v5173_v2  ;;  %vm6484_vm5 = vmmov %vm6472_vm0 }
 0x172   :  { %vm6485_vm12 = vmmov %vm6472_vm0 }
 0x173   :  { %vm6486_vm10 = vmmov %vm6472_vm0 }
 0x174   :  { %4766 = vmatmul.mubr.msk.f32.gmra.mrb[4].mxu0 %vm6473_vm14, %v4761_v34  ;;  %4771 = vmatmul.mubr.msk.f32.gmra.mrb[4].mxu1 %vm6474_vm3, %v4761_v34  ;;  %vm6487_vm14 = vmmov %vm6472_vm0 }
 0x175   :  { %3780 = vmatprep.mubr.f32.mxu0 %v5173_v2  ;;  %3869 = vmatprep.mubr.f32.mxu1 %v5173_v2  ;;  %vm6488_vm3 = vmmov %vm6472_vm0 }
 0x178   :  { %4767 = vmatmul.mubr.msk.f32.gmra.mrb[6].mxu0 %vm6475_vm15, %v4762_v36  ;;  %4772 = vmatmul.mubr.msk.f32.gmra.mrb[6].mxu1 %vm6476_vm8, %v4762_v36  ;;  %vm6489_vm15 = vmmov %vm6472_vm0 }
 0x179   :  { %4030 = vmatprep.mubr.f32.mxu0 %v5173_v2  ;;  %4119 = vmatprep.mubr.f32.mxu1 %v5173_v2  ;;  %vm6490_vm8 = vmmov %vm6472_vm0 }
 0x17c   :  { %4779 = vmatmul.mubr.msk.f32.vlgmr.msra.gmra.mrb[0].mxu0 %vm6477_vm9, %v4773_v29  ;;  %4785 = vmatmul.mubr.msk.f32.vlgmr.msra.gmra.mrb[0].mxu1 %vm6478_vm13, %v4773_v29 }
 0x17d   :  { %4036 = vmatprep.mubr.f32.mxu0 %v5173_v2  ;;  %4125 = vmatprep.mubr.f32.mxu1 %v5173_v2 }
 0x17e   :  { %4794 = vmatpush1.msk.msra.mxu0 %vm5581_vm7, %v3915_v13  ;;  %4800 = vmatpush1.msk.msra.mxu1 %vm5570_vm4, %v3913_v49  ;;  %vm6482_vm4 = vmmov %vm6481_vm1 }
 0x17f   :  { %vm6483_vm7 = vmmov %vm6481_vm1 }
 0x180   :  { %4780 = vmatmul.mubr.msk.f32.gmra.mrb[2].mxu0 %vm6466_vm6, %v4774_v50  ;;  %4786 = vmatmul.mubr.msk.f32.gmra.mrb[2].mxu1 %vm6479_vm11, %v4774_v50 }
 0x181   :  { %4042 = vmatprep.mubr.f32.mxu0 %v5173_v2  ;;  %4131 = vmatprep.mubr.f32.mxu1 %v5173_v2 }
 0x184   :  { %4781 = vmatmul.mubr.msk.f32.gmra.mrb[4].mxu0 %vm6480_vm2, %v4775_v10  ;;  %4787 = vmatmul.mubr.msk.f32.gmra.mrb[4].mxu1 %vm6481_vm1, %v4775_v10 }
 0x185   :  { %4048 = vmatprep.mubr.f32.mxu0 %v5173_v2  ;;  %4137 = vmatprep.mubr.f32.mxu1 %v5173_v2 }
 0x188   :  { %4782 = vmatmul.mubr.msk.f32.gmra.mrb[6].mxu0 %vm6482_vm4, %v4776_v44  ;;  %4788 = vmatmul.mubr.msk.f32.gmra.mrb[6].mxu1 %vm6483_vm7, %v4776_v44 }
 0x189   :  { %4241 = vmatprep.mubr.f32.mxu0 %v5173_v2  ;;  %4330 = vmatprep.mubr.f32.mxu1 %v5173_v2 }
 0x18c   :  { %4795 = vmatmul.mubr.msk.f32.vlgmr.msra.gmra.mrb[0].mxu0 %vm6484_vm5, %v4789_v46  ;;  %4801 = vmatmul.mubr.msk.f32.vlgmr.msra.gmra.mrb[0].mxu1 %vm6485_vm12, %v4789_v46 }
 0x18d   :  { %4247 = vmatprep.mubr.f32.mxu0 %v5173_v2  ;;  %4336 = vmatprep.mubr.f32.mxu1 %v5173_v2 }
 0x190   :  { %4796 = vmatmul.mubr.msk.f32.gmra.mrb[2].mxu0 %vm6486_vm10, %v4790_v51  ;;  %4802 = vmatmul.mubr.msk.f32.gmra.mrb[2].mxu1 %vm6472_vm0, %v4790_v51 }
 0x191   :  { %4253 = vmatprep.mubr.f32.mxu0 %v5173_v2  ;;  %4342 = vmatprep.mubr.f32.mxu1 %v5173_v2 }
 0x194   :  { %4797 = vmatmul.mubr.msk.f32.gmra.mrb[4].mxu0 %vm6487_vm14, %v4791_v52  ;;  %4803 = vmatmul.mubr.msk.f32.gmra.mrb[4].mxu1 %vm6488_vm3, %v4791_v52 }
 0x195   :  { %4259 = vmatprep.mubr.f32.mxu0 %v5173_v2  ;;  %4348 = vmatprep.mubr.f32.mxu1 %v5173_v2  ;;  %v4383_v2 = vpop.permute.xlu1 %4382 }
 0x198   :  { %4798 = vmatmul.mubr.msk.f32.gmra.mrb[6].mxu0 %vm6489_vm15, %v4792_v26  ;;  %4804 = vmatmul.mubr.msk.f32.gmra.mrb[6].mxu1 %vm6490_vm8, %v4792_v26 }
 0x199   :  { %v4388_v35 = vpop.permute.xlu1 %4387 }
 0x25f   :  { %v4243_v53 = vpop.f32.mrb[0].mxu0  ;;  %v4332_v54 = vpop.f32.mrb[0].mxu1 }
 0x260   :  { %v4395_v55 = vadd.f32 %v4378_v27, %v4243_v53  ;;  %v4397_v1 = vadd.f32 %v4378_v27, %v4332_v54  ;;  %v4245_v0 = vpop.f32.mrb[1].mxu0  ;;  %v4334_v56 = vpop.f32.mrb[1].mxu1 }
 0x261   :  { %v4396_v57 = vadd.f32 %v4378_v27, %v4245_v0  ;;  %v4398_v58 = vadd.f32 %v4378_v27, %v4334_v56  ;;  %v4487_v0 = vld [vmem:[%s6361_s2] sm:$0xff] }
 0x262   :  { %v4805_v59 = vmul.f32 -1.442695, %v4395_v55  ;;  %v4807_v60 = vmul.f32 -1.442695, %v4397_v1 }
 0x263   :  { %v4806_v22 = vmul.f32 -1.442695, %v4396_v57  ;;  %v4808_v61 = vmul.f32 -1.442695, %v4398_v58  ;;  %v4249_v62 = vpop.f32.mrb[2].mxu0  ;;  %v4338_v24 = vpop.f32.mrb[2].mxu1 }
 0x264   :  { %5109 = vpow2.f32 %v4805_v59  ;;  %v4399_v63 = vadd.f32 %v4383_v2, %v4249_v62  ;;  %v4401_v9 = vadd.f32 %v4383_v2, %v4338_v24  ;;  %v4251_v15 = vpop.f32.mrb[3].mxu0  ;;  %v4340_v17 = vpop.f32.mrb[3].mxu1  ;;  %v4817_v24 = vld [vmem:[%s6361_s2 + $0x10] sm:$0xff] }
 0x265   :  { %5111 = vpow2.f32 %v4807_v60  ;;  %v4400_v20 = vadd.f32 %v4383_v2, %v4251_v15  ;;  %v4402_v23 = vadd.f32 %v4383_v2, %v4340_v17  ;;  %v4818_v17 = vld [vmem:[%s6361_s2 + $0x18] sm:$0xff] }
 0x266   :  { %5113 = vpow2.f32 %v4806_v22  ;;  %v4809_v21 = vmul.f32 -1.442695, %v4399_v63  ;;  %v4811_v25 = vmul.f32 -1.442695, %v4401_v9  ;;  %v4488_v9 = vld [vmem:[%s6361_s2 + $0x8] sm:$0xff] }
 0x267   :  { %5115 = vpow2.f32 %v4808_v61  ;;  %v4810_v28 = vmul.f32 -1.442695, %v4400_v20  ;;  %v4812_v12 = vmul.f32 -1.442695, %v4402_v23  ;;  %v4255_v30 = vpop.f32.mrb[4].mxu0  ;;  %v4344_v31 = vpop.f32.mrb[4].mxu1 }
 0x268   :  { %5117 = vpow2.f32 %v4809_v21  ;;  %v4257_v32 = vpop.f32.mrb[5].mxu0  ;;  %v4346_v33 = vpop.f32.mrb[5].mxu1  ;;  %v4403_v37 = vadd.f32 %v4388_v35, %v4255_v30  ;;  %v4405_v18 = vadd.f32 %v4388_v35, %v4344_v31 }
 0x269   :  { %5119 = vpow2.f32 %v4811_v25  ;;  %v4404_v40 = vadd.f32 %v4388_v35, %v4257_v32  ;;  %v4406_v6 = vadd.f32 %v4388_v35, %v4346_v33 }
 0x26a   :  { %5121 = vpow2.f32 %v4810_v28  ;;  %v4813_v11 = vmul.f32 -1.442695, %v4403_v37  ;;  %v4815_v16 = vmul.f32 -1.442695, %v4405_v18 }
 0x26b   :  { %5123 = vpow2.f32 %v4812_v12  ;;  %v4261_v39 = vpop.f32.mrb[6].mxu0  ;;  %v4350_v19 = vpop.f32.mrb[6].mxu1  ;;  %v4814_v5 = vmul.f32 -1.442695, %v4404_v40  ;;  %v4816_v7 = vmul.f32 -1.442695, %v4406_v6 }
 0x26c   :  { %v4407_v41 = vadd.f32 %v4393_v38, %v4261_v39  ;;  %v4263_v42 = vpop.f32.mrb[7].mxu0  ;;  %v4352_v43 = vpop.f32.mrb[7].mxu1  ;;  %v4409_v51 = vadd.f32 %v4393_v38, %v4350_v19 }
 0x26d   :  { %v4408_v26 = vadd.f32 %v4393_v38, %v4263_v42  ;;  %v4410_v53 = vadd.f32 %v4393_v38, %v4352_v43 }
 0x26e   :  { %v5110_v45 = vpop.eup %5109  ;;  %5125 = vtanh.f32 %v4407_v41 }
 0x26f   :  { %v5112_v8 = vpop.eup %5111  ;;  %v4447_v14 = vadd.f32 1.0, %v5110_v45 }
 0x270   :  { %v5114_v47 = vpop.eup %5113  ;;  %v4449_v34 = vadd.f32 1.0, %v5112_v8 }
 0x271   :  { %v5116_v3 = vpop.eup %5115  ;;  %5127 = vrcp.f32 %v4447_v14  ;;  %v4448_v13 = vadd.f32 1.0, %v5114_v47 }
 0x272   :  { %v5118_v4 = vpop.eup %5117  ;;  %5129 = vpow2.f32 %v4813_v11  ;;  %v4450_v46 = vadd.f32 1.0, %v5116_v3 }
 0x273   :  { %v5120_v48 = vpop.eup %5119  ;;  %v4451_v36 = vadd.f32 1.0, %v5118_v4  ;;  %5131 = vpow2.f32 %v4815_v16 }
 0x274   :  { %v5122_v29 = vpop.eup %5121  ;;  %5133 = vpow2.f32 %v4814_v5  ;;  %v4453_v50 = vadd.f32 1.0, %v5120_v48 }
 0x275   :  { %v5124_v49 = vpop.eup %5123  ;;  %5135 = vrcp.f32 %v4451_v36  ;;  %v4452_v10 = vadd.f32 1.0, %v5122_v29 }
 0x276   :  { %5137 = vpow2.f32 %v4816_v7  ;;  %v4454_v44 = vadd.f32 1.0, %v5124_v49 }
 0x277   :  { %5139 = vrcp.f32 %v4449_v34 }
 0x278   :  { %5141 = vrcp.f32 %v4448_v13  ;;  %v5126_v52 = vpop.eup %5125 }
 0x279   :  { %5143 = vrcp.f32 %v4453_v50 }
 0x27a   :  { %5145 = vrcp.f32 %v4452_v10 }
 0x27b   :  { %v5128_v27 = vpop.eup %5127  ;;  %5147 = vrcp.f32 %v4454_v44 }
 0x27c   :  { %v5130_v54 = vpop.eup %5129  ;;  %5149 = vrcp.f32 %v4450_v46  ;;  %v4496_v55 = vmul.f32 %v5128_v27, %v5126_v52 }
 0x27d   :  { %v5132_v1 = vpop.eup %5131  ;;  %5151 = vtanh.f32 %v4409_v51  ;;  %v4455_v58 = vadd.f32 1.0, %v5130_v54 }
 0x27e   :  { %v5134_v56 = vpop.eup %5133  ;;  %5153 = vtanh.f32 %v4408_v26  ;;  %v4457_v20 = vadd.f32 1.0, %v5132_v1 }
 0x27f   :  { %v5136_v57 = vpop.eup %5135  ;;  %5155 = vtanh.f32 %v4410_v53  ;;  %v4456_v21 = vadd.f32 1.0, %v5134_v56 }
 0x280   :  { %v5138_v59 = vpop.eup %5137  ;;  %v4492_v60 = vmul.f32 %v5136_v57, %v4487_v0  ;;  %5157 = vrcp.f32 %v4455_v58 }
 0x281   :  { %v5140_v2 = vpop.eup %5139  ;;  %v4458_v30 = vadd.f32 1.0, %v5138_v59 }
 0x282   :  { %v5142_v22 = vpop.eup %5141  ;;  %v4500_v61 = vadd.f32 %v4496_v55, %v4492_v60 }
 0x283   :  { %v5144_v62 = vpop.eup %5143 }
 0x284   :  { %v5146_v63 = vpop.eup %5145  ;;  %5159 = vtanh.f32 %v4500_v61  ;;  %4514 = vst [vmem:[%s6362_s7] sm:$0xff] %v4500_v61  ;;  %v4494_v25 = vmul.f32 %v5144_v62, %v4817_v24 }
 0x285   :  { %v5148_v15 = vpop.eup %5147  ;;  %v4493_v12 = vmul.f32 %v5146_v63, %v4488_v9  ;;  %5161 = vrcp.f32 %v4457_v20 }
 0x286   :  { %v5150_v23 = vpop.eup %5149  ;;  %v4495_v32 = vmul.f32 %v5148_v15, %v4818_v17  ;;  %5163 = vrcp.f32 %v4456_v21 }
 0x287   :  { %v5152_v28 = vpop.eup %5151  ;;  %5165 = vrcp.f32 %v4458_v30 }
 0x288   :  { %v5154_v31 = vpop.eup %5153  ;;  %v4498_v33 = vmul.f32 %v5152_v28, %v5140_v2 }
 0x289   :  { %v5156_v35 = vpop.eup %5155  ;;  %v4497_v37 = vmul.f32 %v5154_v31, %v5142_v22 }
 0x28a   :  { %v4502_v38 = vadd.f32 %v4498_v33, %v4494_v25  ;;  %v4499_v18 = vmul.f32 %v5156_v35, %v5150_v23  ;;  %v5158_v40 = vpop.eup %5157 }
 0x28b   :  { %v4501_v39 = vadd.f32 %v4497_v37, %v4493_v12 }
 0x28c   :  { %5167 = vtanh.f32 %v4502_v38  ;;  %4821 = vst [vmem:[%s6362_s7 + $0x10] sm:$0xff] %v4502_v38  ;;  %v4503_v19 = vadd.f32 %v4499_v18, %v4495_v32 }
 0x28d   :  { %5169 = vtanh.f32 %v4501_v39  ;;  %4515 = vst [vmem:[%s6362_s7 + $0x8] sm:$0xff] %v4501_v39 }
 0x28e   :  { %v5160_v41 = vpop.eup %5159  ;;  %5171 = vtanh.f32 %v4503_v19  ;;  %4822 = vst [vmem:[%s6362_s7 + $0x18] sm:$0xff] %v4503_v19 }
 0x28f   :  { %v4508_v42 = vmul.f32 %v5160_v41, %v5158_v40  ;;  %v5162_v43 = vpop.eup %5161 }
 0x290   :  { %v5164_v45 = vpop.eup %5163 }
 0x291   :  { %4512 = vst [vmem:[%s6363_s6] sm:$0xff] %v4508_v42  ;;  %v5166_v11 = vpop.eup %5165 }
 0x296   :  { %v5168_v6 = vpop.eup %5167 }
 0x297   :  { %v5170_v8 = vpop.eup %5169  ;;  %v4510_v14 = vmul.f32 %v5168_v6, %v5162_v43 }
 0x298   :  { %v5172_v16 = vpop.eup %5171  ;;  %v4509_v47 = vmul.f32 %v5170_v8, %v5164_v45 }
 0x299   :  { %4819 = vst [vmem:[%s6363_s6 + $0x10] sm:$0xff] %v4510_v14  ;;  %v4511_v5 = vmul.f32 %v5172_v16, %v5166_v11 }
 0x29a   :  { %4513 = vst [vmem:[%s6363_s6 + $0x8] sm:$0xff] %v4509_v47 }
 0x29b   :  { %4820 = vst [vmem:[%s6363_s6 + $0x18] sm:$0xff] %v4511_v5 }

</bundles_post_ra>
